<compile_context>
chip_gen: v7x
topology: tpu7x:2x2x1
jax: 0.10.0
libtpu: 0.0.40
codegen_flags: <defaults>
</compile_context>

<pallas_src>
import functools

import jax
import jax.numpy as jnp
from jax import lax
from jax.experimental import pallas as pl
from jax.experimental.pallas import tpu as pltpu


# ----------------------------------------------------------------------------
# Fused kernel: one grid step == one image
# ----------------------------------------------------------------------------
def _comcnn_fused_kernel(x1_ref, w1_ref, b1_ref, w2_ref, s2_ref, mask_ref,
                         w3_ref, b3_ref, o_ref, h1_scr, p3_scr, *,
                         offs2, offs3, m2, m3, h2_store_off):
    cd = h1_scr.dtype

    # ---- layer 1: Conv2d(3,64,3,pad=1)+ReLU as one 27-deep matmul.  h1 is written to
    # VMEM scratch in space-to-depth (phase-stacked) order so the stride-2 taps of layer 2
    # become plain static row-offset slices.
    a1 = jnp.dot(x1_ref[...], w1_ref[...], preferred_element_type=jnp.float32)
    h1_scr[...] = jnp.maximum(a1 + b1_ref[...], 0.0).astype(cd)

    # ---- layer 2: Conv2d(64,64,3,s=2)+BN+ReLU as 9 shift-and-matmul taps (BN scale folded
    # into w2, bias/BN shift folded into s2).  The single garbage pitch column is zeroed by
    # `mask` so it can double as the left/right zero padding of layer 3.
    acc2 = jnp.zeros((m2, w2_ref.shape[-1]), jnp.float32)
    for k, off in enumerate(offs2):                      # statically unrolled, 9 taps
        acc2 = acc2 + jnp.dot(h1_scr[pl.ds(off, m2), :], w2_ref[k],
                              preferred_element_type=jnp.float32)
    h2 = (jnp.maximum(acc2 + s2_ref[...], 0.0) * mask_ref[...]).astype(cd)

    # ---- layer-3 input slab: zero ring + h2 interior, single sublane-aligned store.
    p3_scr[...] = jnp.zeros_like(p3_scr)
    p3_scr[pl.ds(h2_store_off, m2), :] = h2

    # ---- layer 3: Conv2d(64,3,3,pad=1), no activation.
    acc3 = jnp.zeros((m3, w3_ref.shape[-1]), jnp.float32)
    for k, off in enumerate(offs3):                      # statically unrolled, 9 taps
        acc3 = acc3 + jnp.dot(p3_scr[pl.ds(off, m3), :], w3_ref[k],
                              preferred_element_type=jnp.float32)
    o_ref[...] = (acc3 + b3_ref[...]).astype(o_ref.dtype)


def _oihw_to_taps(w_oihw):
    # (Cout, Cin, 3, 3) -> (9, Cin, Cout), tap index k = dy*3 + dx
    co, ci, kh, kw = w_oihw.shape
    return jnp.transpose(w_oihw, (2, 3, 1, 0)).reshape(kh * kw, ci, co)


# ----------------------------------------------------------------------------
# ComCNN forward (parameters match the PyTorch module's __init__ shapes)
# ----------------------------------------------------------------------------
def comcnn_forward(x_nchw, params, *, compute_dtype=jnp.bfloat16):
    N, C, H, W = x_nchw.shape
    assert C == 3, "ComCNN expects 3 input channels"
    assert H % 2 == 0 and W % 2 == 0 and H >= 4 and W >= 4  # TODO(synk): odd sizes need phase padding
    cd = compute_dtype

    Hh, Wh = H // 2, W // 2
    Ho, Wo = (H - 3) // 2 + 1, (W - 3) // 2 + 1              # == Hh - 1, Wh - 1
    m2 = Ho * Wh                                             # layer-2/3 slab rows (pitch Wh)
    m3 = Ho * Wh

    # --- wrapper-side layout plumbing (tiny 3-channel input, duplication is cheap) ---
    x = jnp.transpose(x_nchw, (0, 2, 3, 1))                  # NHWC
    xp = jnp.pad(x, ((0, 0), (1, 1), (1, 1), (0, 0)))
    cols = jnp.concatenate(
        [xp[:, dy:dy + H, dx:dx + W, :] for dy in range(3) for dx in range(3)], axis=-1)
    # phase-stack (space-to-depth) so h1 lands in the layout the stride-2 conv wants
    x1 = jnp.concatenate(
        [cols[:, py::2, px::2, :].reshape(N, Hh * Wh, 27)
         for py in (0, 1) for px in (0, 1)], axis=1).astype(cd)     # (N, H*W, 27)

    # --- weights / folded BatchNorm (inference running-stats semantics) ---
    w1 = jnp.transpose(params["w1"], (2, 3, 1, 0)).reshape(27, 64).astype(cd)
    b1 = params["b1"].reshape(1, 64).astype(jnp.float32)
    eps = 1e-5
    inv_std = 1.0 / jnp.sqrt(params["bn_var"] + eps)
    scale2 = params["bn_gamma"] * inv_std
    shift2 = ((params["b2"] - params["bn_mean"]) * scale2 + params["bn_beta"]
              ).reshape(1, 64).astype(jnp.float32)
    w2 = (_oihw_to_taps(params["w2"]) * scale2[None, None, :]).astype(cd)   # (9, 64, 64)
    w3 = _oihw_to_taps(params["w3"]).astype(cd)                             # (9, 64, 3)
    b3 = params["b3"].reshape(1, 3).astype(jnp.float32)

    # zero the single garbage pitch column of h2 (j == Wo) so it doubles as L/R padding
    mask2 = ((jnp.arange(m2) % Wh) < Wo).astype(jnp.float32).reshape(m2, 1)

    # layer-2 tap offsets into the phase-stacked h1 slab
    offs2 = tuple(((dy % 2) * 2 + (dx % 2)) * (Hh * Wh) + (dy // 2) * Wh + (dx // 2)
                  for dy in range(3) for dx in range(3))
    # layer-3 tap offsets into the zero-ringed pitch-Wh slab; front padding makes the
    # h2 interior store start sublane-aligned (multiple of 8)
    pad_front = (-(Wh + 1)) % 8
    h2_store_off = pad_front + Wh + 1
    offs3 = tuple(pad_front + dy * Wh + dx for dy in range(3) for dx in range(3))
    rows3 = pad_front + (Ho + 2) * Wh + 2                     # covers max tap read

    kernel = functools.partial(
        _comcnn_fused_kernel,
        offs2=offs2, offs3=offs3, m2=m2, m3=m3, h2_store_off=h2_store_off)

    out = pl.pallas_call(
        kernel,
        out_shape=jax.ShapeDtypeStruct((N, m3, 3), jnp.float32),
        grid=(N,),
        in_specs=[
            pl.BlockSpec((None, H * W, 27), lambda g: (g, 0, 0)),   # phase-stacked im2col
            pl.BlockSpec((27, 64), lambda g: (0, 0)),               # w1 (resident: idx const)
            pl.BlockSpec((1, 64), lambda g: (0, 0)),                # b1
            pl.BlockSpec((9, 64, 64), lambda g: (0, 0, 0)),         # w2 (BN scale folded)
            pl.BlockSpec((1, 64), lambda g: (0, 0)),                # shift2
            pl.BlockSpec((m2, 1), lambda g: (0, 0)),                # pitch-column mask
            pl.BlockSpec((9, 64, 3), lambda g: (0, 0, 0)),          # w3
            pl.BlockSpec((1, 3), lambda g: (0, 0)),                 # b3
        ],
        out_specs=pl.BlockSpec((None, m3, 3), lambda g: (g, 0, 0)),
        scratch_shapes=[
            pltpu.VMEM((H * W, 64), cd),       # h1, phase-stacked
            pltpu.VMEM((rows3, 64), cd),       # layer-3 zero-ringed input slab
        ],
        compiler_params=pltpu.CompilerParams(dimension_semantics=("parallel",)),
    )(x1, w1, b1, w2, shift2, mask2, w3, b3)

    y = out.reshape(N, Ho, Wh, 3)[:, :, :Wo, :]               # drop garbage pitch column
    return jnp.transpose(y, (0, 3, 1, 2))                     # back to NCHW


# ----------------------------------------------------------------------------
# Pure-JAX reference (lax.conv) with matching precision for correctness checks
# ----------------------------------------------------------------------------
def comcnn_reference(x, p, compute_dtype):
    dn = ("NCHW", "OIHW", "NCHW")
    cd = compute_dtype
    eps = 1e-5
    inv_std = 1.0 / jnp.sqrt(p["bn_var"] + eps)
    scale2 = p["bn_gamma"] * inv_std
    shift2 = (p["b2"] - p["bn_mean"]) * scale2 + p["bn_beta"]

    y = lax.conv_general_dilated(x.astype(cd), p["w1"].astype(cd), (1, 1), ((1, 1), (1, 1)),
                                 dimension_numbers=dn, preferred_element_type=jnp.float32)
    y = jax.nn.relu(y + p["b1"][None, :, None, None]).astype(cd)
    w2f = (p["w2"] * scale2[:, None, None, None]).astype(cd)
    y = lax.conv_general_dilated(y, w2f, (2, 2), ((0, 0), (0, 0)),
                                 dimension_numbers=dn, preferred_element_type=jnp.float32)
    y = jax.nn.relu(y + shift2[None, :, None, None]).astype(cd)
    y = lax.conv_general_dilated(y, p["w3"].astype(cd), (1, 1), ((1, 1), (1, 1)),
                                 dimension_numbers=dn, preferred_element_type=jnp.float32)
    return y + p["b3"][None, :, None, None]


def init_params(key):
    ks = jax.random.split(key, 10)
    return {
        "w1": 0.1 * jax.random.normal(ks[0], (64, 3, 3, 3), jnp.float32),
        "b1": 0.05 * jax.random.normal(ks[1], (64,), jnp.float32),
        "w2": 0.05 * jax.random.normal(ks[2], (64, 64, 3, 3), jnp.float32),
        "b2": 0.05 * jax.random.normal(ks[3], (64,), jnp.float32),
        "bn_gamma": 1.0 + 0.1 * jax.random.normal(ks[4], (64,), jnp.float32),
        "bn_beta": 0.05 * jax.random.normal(ks[5], (64,), jnp.float32),
        "bn_mean": 0.05 * jax.random.normal(ks[6], (64,), jnp.float32),
        "bn_var": 1.0 + 0.1 * jnp.abs(jax.random.normal(ks[7], (64,), jnp.float32)),
        "w3": 0.1 * jax.random.normal(ks[8], (3, 64, 3, 3), jnp.float32),
        "b3": 0.05 * jax.random.normal(ks[9], (3,), jnp.float32),
    }


if __name__ == "__main__":
    key = jax.random.PRNGKey(0)
    kx, kp = jax.random.split(key)
    x = jax.random.normal(kx, (2, 3, 16, 16), jnp.float32)   # NCHW, like PyTorch
    params = init_params(kp)

    # 1) strict f32 path: matches the PyTorch f32 forward semantics tightly.
    fwd32 = jax.jit(functools.partial(comcnn_forward, compute_dtype=jnp.float32))
    out32 = jax.block_until_ready(fwd32(x, params))
    ref32 = comcnn_reference(x, params, jnp.float32)
    assert out32.shape == (2, 3, 7, 7), out32.shape
    assert jnp.allclose(out32, ref32, atol=1e-4, rtol=1e-4), \
        float(jnp.max(jnp.abs(out32 - ref32)))

    # 2) bf16 perf path (f32 accumulation), checked against a bf16-matched reference.
    fwd16 = jax.jit(functools.partial(comcnn_forward, compute_dtype=jnp.bfloat16))
    out16 = jax.block_until_ready(fwd16(x, params))
    ref16 = comcnn_reference(x, params, jnp.bfloat16)
    assert out16.shape == (2, 3, 7, 7), out16.shape
    assert jnp.allclose(out16, ref16, atol=2e-2, rtol=2e-2), \
        float(jnp.max(jnp.abs(out16 - ref16)))

    print("KERNEL_OK")
</pallas_src>

<mosaic_0001>
module attributes {stable_mosaic.version = 11 : i64} {
  func.func @_comcnn_fused_kernel(%arg0: i32, %arg1: memref<1x256x27xf32, #tpu.memory_space<vmem>>, %arg2: memref<27x64xf32, #tpu.memory_space<vmem>>, %arg3: memref<1x64xf32, #tpu.memory_space<vmem>>, %arg4: memref<9x64x64xf32, #tpu.memory_space<vmem>>, %arg5: memref<1x64xf32, #tpu.memory_space<vmem>>, %arg6: memref<56x1xf32, #tpu.memory_space<vmem>>, %arg7: memref<9x64x3xf32, #tpu.memory_space<vmem>>, %arg8: memref<1x3xf32, #tpu.memory_space<vmem>>, %arg9: memref<1x56x3xf32, #tpu.memory_space<vmem>>, %arg10: memref<256x64xf32, #tpu.memory_space<vmem>>, %arg11: memref<81x64xf32, #tpu.memory_space<vmem>>) attributes {dimension_semantics = [#tpu.dimension_semantics<parallel>], iteration_bounds = array<i64: 2>, scalar_prefetch = 0 : i64, scratch_operands = 2 : i64, tpu.core_type = #tpu.core_type<tc>, window_params = [{transform_indices = @transform_0, window_bounds = array<i64: 1, 256, 27>}, {pipeline_mode = #tpu.pipeline_mode<synchronous>, transform_indices = @transform_1, window_bounds = array<i64: 27, 64>}, {pipeline_mode = #tpu.pipeline_mode<synchronous>, transform_indices = @transform_2, window_bounds = array<i64: 1, 64>}, {pipeline_mode = #tpu.pipeline_mode<synchronous>, transform_indices = @transform_3, window_bounds = array<i64: 9, 64, 64>}, {pipeline_mode = #tpu.pipeline_mode<synchronous>, transform_indices = @transform_4, window_bounds = array<i64: 1, 64>}, {pipeline_mode = #tpu.pipeline_mode<synchronous>, transform_indices = @transform_5, window_bounds = array<i64: 56, 1>}, {pipeline_mode = #tpu.pipeline_mode<synchronous>, transform_indices = @transform_6, window_bounds = array<i64: 9, 64, 3>}, {pipeline_mode = #tpu.pipeline_mode<synchronous>, transform_indices = @transform_7, window_bounds = array<i64: 1, 3>}, {transform_indices = @transform_8, window_bounds = array<i64: 1, 56, 3>}]} {
    %c0 = arith.constant 0 : index
    %c0_0 = arith.constant 0 : index
    %c0_1 = arith.constant 0 : index
    %0 = vector.load %arg1[%c0, %c0_0, %c0_1] : memref<1x256x27xf32, #tpu.memory_space<vmem>>, vector<1x256x27xf32>
    %1 = vector.shape_cast %0 : vector<1x256x27xf32> to vector<256x27xf32>
    %c0_2 = arith.constant 0 : index
    %c0_3 = arith.constant 0 : index
    %2 = vector.load %arg2[%c0_2, %c0_3] : memref<27x64xf32, #tpu.memory_space<vmem>>, vector<27x64xf32>
    %cst = arith.constant dense<0.000000e+00> : vector<256x64xf32>
    %3 = tpu.matmul %1, %2, %cst {dimension_numbers = #tpu.dot_dimension_numbers<[1], [0], [0], [1], [0, 0, 1, 1], [], []>} : vector<256x27xf32>, vector<27x64xf32>, vector<256x64xf32> -> vector<256x64xf32>
    %c0_4 = arith.constant 0 : index
    %c0_5 = arith.constant 0 : index
    %4 = vector.load %arg3[%c0_4, %c0_5] : memref<1x64xf32, #tpu.memory_space<vmem>>, vector<1x64xf32>
    %5 = vector.broadcast %4 : vector<1x64xf32> to vector<256x64xf32>
    %6 = arith.addf %3, %5 : vector<256x64xf32>
    %cst_6 = arith.constant 0.000000e+00 : f32
    %7 = vector.broadcast %cst_6 : f32 to vector<256x64xf32>
    %8 = arith.maximumf %6, %7 : vector<256x64xf32>
    %c0_7 = arith.constant 0 : index
    %c0_8 = arith.constant 0 : index
    %9 = vector.load %arg10[%c0_7, %c0_8] : memref<256x64xf32, #tpu.memory_space<vmem>>, vector<256x64xf32>
    tpu.vector_store %arg10[%c0_7, %c0_8], %8 {strides = array<i32>} : memref<256x64xf32, #tpu.memory_space<vmem>>, vector<256x64xf32>,
    %cst_9 = arith.constant 0.000000e+00 : f32
    %10 = vector.broadcast %cst_9 : f32 to vector<56x64xf32>
    %c0_10 = arith.constant 0 : index
    %c0_11 = arith.constant 0 : index
    %11 = vector.load %arg10[%c0_10, %c0_11] : memref<256x64xf32, #tpu.memory_space<vmem>>, vector<56x64xf32>
    %c0_12 = arith.constant 0 : index
    %c0_13 = arith.constant 0 : index
    %c0_14 = arith.constant 0 : index
    %12 = vector.load %arg4[%c0_12, %c0_13, %c0_14] : memref<9x64x64xf32, #tpu.memory_space<vmem>>, vector<1x64x64xf32>
    %13 = vector.shape_cast %12 : vector<1x64x64xf32> to vector<64x64xf32>
    %cst_15 = arith.constant dense<0.000000e+00> : vector<56x64xf32>
    %14 = tpu.matmul %11, %13, %cst_15 {dimension_numbers = #tpu.dot_dimension_numbers<[1], [0], [0], [1], [0, 0, 1, 1], [], []>} : vector<56x64xf32>, vector<64x64xf32>, vector<56x64xf32> -> vector<56x64xf32>
    %15 = arith.addf %10, %14 : vector<56x64xf32>
    %c64 = arith.constant 64 : index
    %c0_16 = arith.constant 0 : index
    %16 = vector.load %arg10[%c64, %c0_16] : memref<256x64xf32, #tpu.memory_space<vmem>>, vector<56x64xf32>
    %c1 = arith.constant 1 : index
    %c0_17 = arith.constant 0 : index
    %c0_18 = arith.constant 0 : index
    %17 = vector.load %arg4[%c1, %c0_17, %c0_18] : memref<9x64x64xf32, #tpu.memory_space<vmem>>, vector<1x64x64xf32>
    %18 = vector.shape_cast %17 : vector<1x64x64xf32> to vector<64x64xf32>
    %cst_19 = arith.constant dense<0.000000e+00> : vector<56x64xf32>
    %19 = tpu.matmul %16, %18, %cst_19 {dimension_numbers = #tpu.dot_dimension_numbers<[1], [0], [0], [1], [0, 0, 1, 1], [], []>} : vector<56x64xf32>, vector<64x64xf32>, vector<56x64xf32> -> vector<56x64xf32>
    %20 = arith.addf %15, %19 : vector<56x64xf32>
    %c1_20 = arith.constant 1 : index
    %c0_21 = arith.constant 0 : index
    %21 = vector.load %arg10[%c1_20, %c0_21] : memref<256x64xf32, #tpu.memory_space<vmem>>, vector<56x64xf32>
    %c2 = arith.constant 2 : index
    %c0_22 = arith.constant 0 : index
    %c0_23 = arith.constant 0 : index
    %22 = vector.load %arg4[%c2, %c0_22, %c0_23] : memref<9x64x64xf32, #tpu.memory_space<vmem>>, vector<1x64x64xf32>
    %23 = vector.shape_cast %22 : vector<1x64x64xf32> to vector<64x64xf32>
    %cst_24 = arith.constant dense<0.000000e+00> : vector<56x64xf32>
    %24 = tpu.matmul %21, %23, %cst_24 {dimension_numbers = #tpu.dot_dimension_numbers<[1], [0], [0], [1], [0, 0, 1, 1], [], []>} : vector<56x64xf32>, vector<64x64xf32>, vector<56x64xf32> -> vector<56x64xf32>
    %25 = arith.addf %20, %24 : vector<56x64xf32>
    %c128 = arith.constant 128 : index
    %c0_25 = arith.constant 0 : index
    %26 = vector.load %arg10[%c128, %c0_25] : memref<256x64xf32, #tpu.memory_space<vmem>>, vector<56x64xf32>
    %c3 = arith.constant 3 : index
    %c0_26 = arith.constant 0 : index
    %c0_27 = arith.constant 0 : index
    %27 = vector.load %arg4[%c3, %c0_26, %c0_27] : memref<9x64x64xf32, #tpu.memory_space<vmem>>, vector<1x64x64xf32>
    %28 = vector.shape_cast %27 : vector<1x64x64xf32> to vector<64x64xf32>
    %cst_28 = arith.constant dense<0.000000e+00> : vector<56x64xf32>
    %29 = tpu.matmul %26, %28, %cst_28 {dimension_numbers = #tpu.dot_dimension_numbers<[1], [0], [0], [1], [0, 0, 1, 1], [], []>} : vector<56x64xf32>, vector<64x64xf32>, vector<56x64xf32> -> vector<56x64xf32>
    %30 = arith.addf %25, %29 : vector<56x64xf32>
    %c192 = arith.constant 192 : index
    %c0_29 = arith.constant 0 : index
    %31 = vector.load %arg10[%c192, %c0_29] : memref<256x64xf32, #tpu.memory_space<vmem>>, vector<56x64xf32>
    %c4 = arith.constant 4 : index
    %c0_30 = arith.constant 0 : index
    %c0_31 = arith.constant 0 : index
    %32 = vector.load %arg4[%c4, %c0_30, %c0_31] : memref<9x64x64xf32, #tpu.memory_space<vmem>>, vector<1x64x64xf32>
    %33 = vector.shape_cast %32 : vector<1x64x64xf32> to vector<64x64xf32>
    %cst_32 = arith.constant dense<0.000000e+00> : vector<56x64xf32>
    %34 = tpu.matmul %31, %33, %cst_32 {dimension_numbers = #tpu.dot_dimension_numbers<[1], [0], [0], [1], [0, 0, 1, 1], [], []>} : vector<56x64xf32>, vector<64x64xf32>, vector<56x64xf32> -> vector<56x64xf32>
    %35 = arith.addf %30, %34 : vector<56x64xf32>
    %c129 = arith.constant 129 : index
    %c0_33 = arith.constant 0 : index
    %36 = vector.load %arg10[%c129, %c0_33] : memref<256x64xf32, #tpu.memory_space<vmem>>, vector<56x64xf32>
    %c5 = arith.constant 5 : index
    %c0_34 = arith.constant 0 : index
    %c0_35 = arith.constant 0 : index
    %37 = vector.load %arg4[%c5, %c0_34, %c0_35] : memref<9x64x64xf32, #tpu.memory_space<vmem>>, vector<1x64x64xf32>
    %38 = vector.shape_cast %37 : vector<1x64x64xf32> to vector<64x64xf32>
    %cst_36 = arith.constant dense<0.000000e+00> : vector<56x64xf32>
    %39 = tpu.matmul %36, %38, %cst_36 {dimension_numbers = #tpu.dot_dimension_numbers<[1], [0], [0], [1], [0, 0, 1, 1], [], []>} : vector<56x64xf32>, vector<64x64xf32>, vector<56x64xf32> -> vector<56x64xf32>
    %40 = arith.addf %35, %39 : vector<56x64xf32>
    %c8 = arith.constant 8 : index
    %c0_37 = arith.constant 0 : index
    %41 = vector.load %arg10[%c8, %c0_37] : memref<256x64xf32, #tpu.memory_space<vmem>>, vector<56x64xf32>
    %c6 = arith.constant 6 : index
    %c0_38 = arith.constant 0 : index
    %c0_39 = arith.constant 0 : index
    %42 = vector.load %arg4[%c6, %c0_38, %c0_39] : memref<9x64x64xf32, #tpu.memory_space<vmem>>, vector<1x64x64xf32>
    %43 = vector.shape_cast %42 : vector<1x64x64xf32> to vector<64x64xf32>
    %cst_40 = arith.constant dense<0.000000e+00> : vector<56x64xf32>
    %44 = tpu.matmul %41, %43, %cst_40 {dimension_numbers = #tpu.dot_dimension_numbers<[1], [0], [0], [1], [0, 0, 1, 1], [], []>} : vector<56x64xf32>, vector<64x64xf32>, vector<56x64xf32> -> vector<56x64xf32>
    %45 = arith.addf %40, %44 : vector<56x64xf32>
    %c72 = arith.constant 72 : index
    %c0_41 = arith.constant 0 : index
    %46 = vector.load %arg10[%c72, %c0_41] : memref<256x64xf32, #tpu.memory_space<vmem>>, vector<56x64xf32>
    %c7 = arith.constant 7 : index
    %c0_42 = arith.constant 0 : index
    %c0_43 = arith.constant 0 : index
    %47 = vector.load %arg4[%c7, %c0_42, %c0_43] : memref<9x64x64xf32, #tpu.memory_space<vmem>>, vector<1x64x64xf32>
    %48 = vector.shape_cast %47 : vector<1x64x64xf32> to vector<64x64xf32>
    %cst_44 = arith.constant dense<0.000000e+00> : vector<56x64xf32>
    %49 = tpu.matmul %46, %48, %cst_44 {dimension_numbers = #tpu.dot_dimension_numbers<[1], [0], [0], [1], [0, 0, 1, 1], [], []>} : vector<56x64xf32>, vector<64x64xf32>, vector<56x64xf32> -> vector<56x64xf32>
    %50 = arith.addf %45, %49 : vector<56x64xf32>
    %c9 = arith.constant 9 : index
    %c0_45 = arith.constant 0 : index
    %51 = vector.load %arg10[%c9, %c0_45] : memref<256x64xf32, #tpu.memory_space<vmem>>, vector<56x64xf32>
    %c8_46 = arith.constant 8 : index
    %c0_47 = arith.constant 0 : index
    %c0_48 = arith.constant 0 : index
    %52 = vector.load %arg4[%c8_46, %c0_47, %c0_48] : memref<9x64x64xf32, #tpu.memory_space<vmem>>, vector<1x64x64xf32>
    %53 = vector.shape_cast %52 : vector<1x64x64xf32> to vector<64x64xf32>
    %cst_49 = arith.constant dense<0.000000e+00> : vector<56x64xf32>
    %54 = tpu.matmul %51, %53, %cst_49 {dimension_numbers = #tpu.dot_dimension_numbers<[1], [0], [0], [1], [0, 0, 1, 1], [], []>} : vector<56x64xf32>, vector<64x64xf32>, vector<56x64xf32> -> vector<56x64xf32>
    %55 = arith.addf %50, %54 : vector<56x64xf32>
    %c0_50 = arith.constant 0 : index
    %c0_51 = arith.constant 0 : index
    %56 = vector.load %arg5[%c0_50, %c0_51] : memref<1x64xf32, #tpu.memory_space<vmem>>, vector<1x64xf32>
    %57 = vector.broadcast %56 : vector<1x64xf32> to vector<56x64xf32>
    %58 = arith.addf %55, %57 : vector<56x64xf32>
    %cst_52 = arith.constant 0.000000e+00 : f32
    %59 = vector.broadcast %cst_52 : f32 to vector<56x64xf32>
    %60 = arith.maximumf %58, %59 : vector<56x64xf32>
    %c0_53 = arith.constant 0 : index
    %c0_54 = arith.constant 0 : index
    %61 = vector.load %arg6[%c0_53, %c0_54] : memref<56x1xf32, #tpu.memory_space<vmem>>, vector<56x1xf32>
    %62 = vector.broadcast %61 : vector<56x1xf32> to vector<56x64xf32>
    %63 = arith.mulf %60, %62 : vector<56x64xf32>
    %cst_55 = arith.constant 0.000000e+00 : f32
    %64 = vector.broadcast %cst_55 : f32 to vector<81x64xf32>
    %c0_56 = arith.constant 0 : index
    %c0_57 = arith.constant 0 : index
    %65 = vector.load %arg11[%c0_56, %c0_57] : memref<81x64xf32, #tpu.memory_space<vmem>>, vector<81x64xf32>
    tpu.vector_store %arg11[%c0_56, %c0_57], %64 {strides = array<i32>} : memref<81x64xf32, #tpu.memory_space<vmem>>, vector<81x64xf32>,
    %c16 = arith.constant 16 : index
    %c0_58 = arith.constant 0 : index
    %66 = vector.load %arg11[%c16, %c0_58] : memref<81x64xf32, #tpu.memory_space<vmem>>, vector<56x64xf32>
    tpu.vector_store %arg11[%c16, %c0_58], %63 {strides = array<i32>} : memref<81x64xf32, #tpu.memory_space<vmem>>, vector<56x64xf32>,
    %cst_59 = arith.constant 0.000000e+00 : f32
    %67 = vector.broadcast %cst_59 : f32 to vector<56x3xf32>
    %c7_60 = arith.constant 7 : index
    %c0_61 = arith.constant 0 : index
    %68 = vector.load %arg11[%c7_60, %c0_61] : memref<81x64xf32, #tpu.memory_space<vmem>>, vector<56x64xf32>
    %c0_62 = arith.constant 0 : index
    %c0_63 = arith.constant 0 : index
    %c0_64 = arith.constant 0 : index
    %69 = vector.load %arg7[%c0_62, %c0_63, %c0_64] : memref<9x64x3xf32, #tpu.memory_space<vmem>>, vector<1x64x3xf32>
    %70 = vector.shape_cast %69 : vector<1x64x3xf32> to vector<64x3xf32>
    %cst_65 = arith.constant dense<0.000000e+00> : vector<56x3xf32>
    %71 = tpu.matmul %68, %70, %cst_65 {dimension_numbers = #tpu.dot_dimension_numbers<[1], [0], [0], [1], [0, 0, 1, 1], [], []>} : vector<56x64xf32>, vector<64x3xf32>, vector<56x3xf32> -> vector<56x3xf32>
    %72 = arith.addf %67, %71 : vector<56x3xf32>
    %c8_66 = arith.constant 8 : index
    %c0_67 = arith.constant 0 : index
    %73 = vector.load %arg11[%c8_66, %c0_67] : memref<81x64xf32, #tpu.memory_space<vmem>>, vector<56x64xf32>
    %c1_68 = arith.constant 1 : index
    %c0_69 = arith.constant 0 : index
    %c0_70 = arith.constant 0 : index
    %74 = vector.load %arg7[%c1_68, %c0_69, %c0_70] : memref<9x64x3xf32, #tpu.memory_space<vmem>>, vector<1x64x3xf32>
    %75 = vector.shape_cast %74 : vector<1x64x3xf32> to vector<64x3xf32>
    %cst_71 = arith.constant dense<0.000000e+00> : vector<56x3xf32>
    %76 = tpu.matmul %73, %75, %cst_71 {dimension_numbers = #tpu.dot_dimension_numbers<[1], [0], [0], [1], [0, 0, 1, 1], [], []>} : vector<56x64xf32>, vector<64x3xf32>, vector<56x3xf32> -> vector<56x3xf32>
    %77 = arith.addf %72, %76 : vector<56x3xf32>
    %c9_72 = arith.constant 9 : index
    %c0_73 = arith.constant 0 : index
    %78 = vector.load %arg11[%c9_72, %c0_73] : memref<81x64xf32, #tpu.memory_space<vmem>>, vector<56x64xf32>
    %c2_74 = arith.constant 2 : index
    %c0_75 = arith.constant 0 : index
    %c0_76 = arith.constant 0 : index
    %79 = vector.load %arg7[%c2_74, %c0_75, %c0_76] : memref<9x64x3xf32, #tpu.memory_space<vmem>>, vector<1x64x3xf32>
    %80 = vector.shape_cast %79 : vector<1x64x3xf32> to vector<64x3xf32>
    %cst_77 = arith.constant dense<0.000000e+00> : vector<56x3xf32>
    %81 = tpu.matmul %78, %80, %cst_77 {dimension_numbers = #tpu.dot_dimension_numbers<[1], [0], [0], [1], [0, 0, 1, 1], [], []>} : vector<56x64xf32>, vector<64x3xf32>, vector<56x3xf32> -> vector<56x3xf32>
    %82 = arith.addf %77, %81 : vector<56x3xf32>
    %c15 = arith.constant 15 : index
    %c0_78 = arith.constant 0 : index
    %83 = vector.load %arg11[%c15, %c0_78] : memref<81x64xf32, #tpu.memory_space<vmem>>, vector<56x64xf32>
    %c3_79 = arith.constant 3 : index
    %c0_80 = arith.constant 0 : index
    %c0_81 = arith.constant 0 : index
    %84 = vector.load %arg7[%c3_79, %c0_80, %c0_81] : memref<9x64x3xf32, #tpu.memory_space<vmem>>, vector<1x64x3xf32>
    %85 = vector.shape_cast %84 : vector<1x64x3xf32> to vector<64x3xf32>
    %cst_82 = arith.constant dense<0.000000e+00> : vector<56x3xf32>
    %86 = tpu.matmul %83, %85, %cst_82 {dimension_numbers = #tpu.dot_dimension_numbers<[1], [0], [0], [1], [0, 0, 1, 1], [], []>} : vector<56x64xf32>, vector<64x3xf32>, vector<56x3xf32> -> vector<56x3xf32>
    %87 = arith.addf %82, %86 : vector<56x3xf32>
    %c16_83 = arith.constant 16 : index
    %c0_84 = arith.constant 0 : index
    %88 = vector.load %arg11[%c16_83, %c0_84] : memref<81x64xf32, #tpu.memory_space<vmem>>, vector<56x64xf32>
    %c4_85 = arith.constant 4 : index
    %c0_86 = arith.constant 0 : index
    %c0_87 = arith.constant 0 : index
    %89 = vector.load %arg7[%c4_85, %c0_86, %c0_87] : memref<9x64x3xf32, #tpu.memory_space<vmem>>, vector<1x64x3xf32>
    %90 = vector.shape_cast %89 : vector<1x64x3xf32> to vector<64x3xf32>
    %cst_88 = arith.constant dense<0.000000e+00> : vector<56x3xf32>
    %91 = tpu.matmul %88, %90, %cst_88 {dimension_numbers = #tpu.dot_dimension_numbers<[1], [0], [0], [1], [0, 0, 1, 1], [], []>} : vector<56x64xf32>, vector<64x3xf32>, vector<56x3xf32> -> vector<56x3xf32>
    %92 = arith.addf %87, %91 : vector<56x3xf32>
    %c17 = arith.constant 17 : index
    %c0_89 = arith.constant 0 : index
    %93 = vector.load %arg11[%c17, %c0_89] : memref<81x64xf32, #tpu.memory_space<vmem>>, vector<56x64xf32>
    %c5_90 = arith.constant 5 : index
    %c0_91 = arith.constant 0 : index
    %c0_92 = arith.constant 0 : index
    %94 = vector.load %arg7[%c5_90, %c0_91, %c0_92] : memref<9x64x3xf32, #tpu.memory_space<vmem>>, vector<1x64x3xf32>
    %95 = vector.shape_cast %94 : vector<1x64x3xf32> to vector<64x3xf32>
    %cst_93 = arith.constant dense<0.000000e+00> : vector<56x3xf32>
    %96 = tpu.matmul %93, %95, %cst_93 {dimension_numbers = #tpu.dot_dimension_numbers<[1], [0], [0], [1], [0, 0, 1, 1], [], []>} : vector<56x64xf32>, vector<64x3xf32>, vector<56x3xf32> -> vector<56x3xf32>
    %97 = arith.addf %92, %96 : vector<56x3xf32>
    %c23 = arith.constant 23 : index
    %c0_94 = arith.constant 0 : index
    %98 = vector.load %arg11[%c23, %c0_94] : memref<81x64xf32, #tpu.memory_space<vmem>>, vector<56x64xf32>
    %c6_95 = arith.constant 6 : index
    %c0_96 = arith.constant 0 : index
    %c0_97 = arith.constant 0 : index
    %99 = vector.load %arg7[%c6_95, %c0_96, %c0_97] : memref<9x64x3xf32, #tpu.memory_space<vmem>>, vector<1x64x3xf32>
    %100 = vector.shape_cast %99 : vector<1x64x3xf32> to vector<64x3xf32>
    %cst_98 = arith.constant dense<0.000000e+00> : vector<56x3xf32>
    %101 = tpu.matmul %98, %100, %cst_98 {dimension_numbers = #tpu.dot_dimension_numbers<[1], [0], [0], [1], [0, 0, 1, 1], [], []>} : vector<56x64xf32>, vector<64x3xf32>, vector<56x3xf32> -> vector<56x3xf32>
    %102 = arith.addf %97, %101 : vector<56x3xf32>
    %c24 = arith.constant 24 : index
    %c0_99 = arith.constant 0 : index
    %103 = vector.load %arg11[%c24, %c0_99] : memref<81x64xf32, #tpu.memory_space<vmem>>, vector<56x64xf32>
    %c7_100 = arith.constant 7 : index
    %c0_101 = arith.constant 0 : index
    %c0_102 = arith.constant 0 : index
    %104 = vector.load %arg7[%c7_100, %c0_101, %c0_102] : memref<9x64x3xf32, #tpu.memory_space<vmem>>, vector<1x64x3xf32>
    %105 = vector.shape_cast %104 : vector<1x64x3xf32> to vector<64x3xf32>
    %cst_103 = arith.constant dense<0.000000e+00> : vector<56x3xf32>
    %106 = tpu.matmul %103, %105, %cst_103 {dimension_numbers = #tpu.dot_dimension_numbers<[1], [0], [0], [1], [0, 0, 1, 1], [], []>} : vector<56x64xf32>, vector<64x3xf32>, vector<56x3xf32> -> vector<56x3xf32>
    %107 = arith.addf %102, %106 : vector<56x3xf32>
    %c25 = arith.constant 25 : index
    %c0_104 = arith.constant 0 : index
    %108 = vector.load %arg11[%c25, %c0_104] : memref<81x64xf32, #tpu.memory_space<vmem>>, vector<56x64xf32>
    %c8_105 = arith.constant 8 : index
    %c0_106 = arith.constant 0 : index
    %c0_107 = arith.constant 0 : index
    %109 = vector.load %arg7[%c8_105, %c0_106, %c0_107] : memref<9x64x3xf32, #tpu.memory_space<vmem>>, vector<1x64x3xf32>
    %110 = vector.shape_cast %109 : vector<1x64x3xf32> to vector<64x3xf32>
    %cst_108 = arith.constant dense<0.000000e+00> : vector<56x3xf32>
    %111 = tpu.matmul %108, %110, %cst_108 {dimension_numbers = #tpu.dot_dimension_numbers<[1], [0], [0], [1], [0, 0, 1, 1], [], []>} : vector<56x64xf32>, vector<64x3xf32>, vector<56x3xf32> -> vector<56x3xf32>
    %112 = arith.addf %107, %111 : vector<56x3xf32>
    %c0_109 = arith.constant 0 : index
    %c0_110 = arith.constant 0 : index
    %113 = vector.load %arg8[%c0_109, %c0_110] : memref<1x3xf32, #tpu.memory_space<vmem>>, vector<1x3xf32>
    %114 = vector.broadcast %113 : vector<1x3xf32> to vector<56x3xf32>
    %115 = arith.addf %112, %114 : vector<56x3xf32>
    %c0_111 = arith.constant 0 : index
    %c0_112 = arith.constant 0 : index
    %c0_113 = arith.constant 0 : index
    %116 = vector.load %arg9[%c0_111, %c0_112, %c0_113] : memref<1x56x3xf32, #tpu.memory_space<vmem>>, vector<1x56x3xf32>
    %117 = vector.shape_cast %116 : vector<1x56x3xf32> to vector<56x3xf32>
    %118 = vector.shape_cast %115 : vector<56x3xf32> to vector<1x56x3xf32>
    tpu.vector_store %arg9[%c0_111, %c0_112, %c0_113], %118 {strides = array<i32>} : memref<1x56x3xf32, #tpu.memory_space<vmem>>, vector<1x56x3xf32>,
    return
  }
  func.func @transform_0(%arg0: i32) -> (i32, i32, i32) {
    %c0_i32 = arith.constant 0 : i32
    %c0_i32_0 = arith.constant 0 : i32
    %c0_i32_1 = arith.constant 0 : i32
    return %arg0, %c0_i32, %c0_i32_0 : i32, i32, i32
  }
  func.func @transform_1(%arg0: i32) -> (i32, i32) {
    %c0_i32 = arith.constant 0 : i32
    %c0_i32_0 = arith.constant 0 : i32
    %c0_i32_1 = arith.constant 0 : i32
    return %c0_i32, %c0_i32_0 : i32, i32
  }
  func.func @transform_2(%arg0: i32) -> (i32, i32) {
    %c0_i32 = arith.constant 0 : i32
    %c0_i32_0 = arith.constant 0 : i32
    %c0_i32_1 = arith.constant 0 : i32
    return %c0_i32, %c0_i32_0 : i32, i32
  }
  func.func @transform_3(%arg0: i32) -> (i32, i32, i32) {
    %c0_i32 = arith.constant 0 : i32
    %c0_i32_0 = arith.constant 0 : i32
    %c0_i32_1 = arith.constant 0 : i32
    %c0_i32_2 = arith.constant 0 : i32
    return %c0_i32, %c0_i32_0, %c0_i32_1 : i32, i32, i32
  }
  func.func @transform_4(%arg0: i32) -> (i32, i32) {
    %c0_i32 = arith.constant 0 : i32
    %c0_i32_0 = arith.constant 0 : i32
    %c0_i32_1 = arith.constant 0 : i32
    return %c0_i32, %c0_i32_0 : i32, i32
  }
  func.func @transform_5(%arg0: i32) -> (i32, i32) {
    %c0_i32 = arith.constant 0 : i32
    %c0_i32_0 = arith.constant 0 : i32
    %c0_i32_1 = arith.constant 0 : i32
    return %c0_i32, %c0_i32_0 : i32, i32
  }
  func.func @transform_6(%arg0: i32) -> (i32, i32, i32) {
    %c0_i32 = arith.constant 0 : i32
    %c0_i32_0 = arith.constant 0 : i32
    %c0_i32_1 = arith.constant 0 : i32
    %c0_i32_2 = arith.constant 0 : i32
    return %c0_i32, %c0_i32_0, %c0_i32_1 : i32, i32, i32
  }
  func.func @transform_7(%arg0: i32) -> (i32, i32) {
    %c0_i32 = arith.constant 0 : i32
    %c0_i32_0 = arith.constant 0 : i32
    %c0_i32_1 = arith.constant 0 : i32
    return %c0_i32, %c0_i32_0 : i32, i32
  }
  func.func @transform_8(%arg0: i32) -> (i32, i32, i32) {
    %c0_i32 = arith.constant 0 : i32
    %c0_i32_0 = arith.constant 0 : i32
    %c0_i32_1 = arith.constant 0 : i32
    return %arg0, %c0_i32, %c0_i32_0 : i32, i32, i32
  }
}

</mosaic_0001>

<bundles_post_ra>
// kernel: comcnn_forward.1
= control target key start
LH: loop header
LB: loop body
LE: loop exit
PB: predicated region body
PF: predicated region fallthrough
CT: control target
= control target key end

     0   :  { %s5097_s27 = smov 0   ;;  %s6425_s0 = inlined_call_operand.vmem [shape: f32[2,256,27], index: 0, kind: input, shape index: {}]   ;;  %s6426_s1 = inlined_call_operand.vmem [shape: f32[27,64], index: 1, kind: input, shape index: {}]   ;;  %s6427_s2 = inlined_call_operand.vmem [shape: f32[1,64], index: 2, kind: input, shape index: {}]   ;;  %s6428_s3 = inlined_call_operand.vmem [shape: f32[9,64,64], index: 3, kind: input, shape index: {}]   ;;  %s6429_s4 = inlined_call_operand.vmem [shape: f32[1,64], index: 4, kind: input, shape index: {}]   ;;  %s6430_s5 = inlined_call_operand.vmem [shape: f32[56,1], index: 5, kind: input, shape index: {}]   ;;  %s6431_s6 = inlined_call_operand.vmem [shape: f32[9,64,3], index: 6, kind: input, shape index: {}]   ;;  %s6432_s7 = inlined_call_operand.vmem [shape: f32[1,3], index: 7, kind: input, shape index: {}]   ;;  %s6433_s8 = inlined_call_operand.vmem [shape: f32[2,56,3], index: 8, kind: output, shape index: {}]  }
   0x1 LB: > { %s3468_s28 = sadd.s32 4294967295, %s5045_s27   ;;  %p3472_p0 = scmp.ge.s32.totalorder %s5045_s27, 1  ;;  %s5045_s27 = sphi %s5097_s27, %s18_s27  }
   0x2   : > { %p262_p1 = scmp.lt.s32.totalorder %s5045_s27, 3 }
   0x4   : > { %p263_p2 = pnand %p3472_p0, %p262_p1 }
   0x5   : > { %v338_v0 = vld [vmem:[%s6426_s1] sm:$0xff] (!%p263_p2)  ;;  %v339_v1 = vld [vmem:[%s6426_s1 + $0x8] sm:$0xff] (!%p263_p2)  ;;  %v340_v2 = vld [vmem:[%s6426_s1 + $0x10] sm:$0xff] (!%p263_p2)  ;;  %vm446_vm0 = vcmask (!%p263_p2), 1042432   ;;  %p296_p3 = scmp.lt.s32.totalorder (!%p263_p2), %s3468_s28, 1  ;;  %vm5047_vm1 = vmmov (!%p263_p2), 1  }
   0x6   : > { %266 = sbr.rel (%p263_p2) target bundleno = 950 (0x3b6), region = 52  ;;  %v4797_v3 = vpack.c.bf16 (!%p263_p2), %v339_v1, %v338_v0  ;;  %v341_v4 = vld [vmem:[%s6426_s1 + $0x18] sm:$0x7] (!%p263_p2)  ;;  %vm4802_vm2 = vmpackc.low (!%p263_p2), %vm446_vm0, %vm5047_vm1  ;;  %v5048_v6 = vmov (!%p263_p2), 0.0|0.0   ;;  %vm349_vm3 = vcmask (!%p263_p2), 220160   ;;  %v3532_v7 = vld [vmem:[%s6428_s3 + $0x80] sm:$0xff] (!%p263_p2) }
   0x7   : > { %v4801_v5 = vpack.c.bf16 (!%p263_p2), %v341_v4, %v340_v2  ;;  %4807 = vmatprep.subr.bf16.mxu1 (!%p263_p2), %v5048_v6  ;;  %v3533_v8 = vld [vmem:[%s6428_s3 + $0x88] sm:$0xff] (!%p263_p2)  ;;  %v3534_v42 = vld [vmem:[%s6428_s3 + $0x90] sm:$0xff] (!%p263_p2)  ;;  %v3535_v43 = vld [vmem:[%s6428_s3 + $0x98] sm:$0xff] (!%p263_p2)  ;;  %vm707_vm4 = vcmask (!%p263_p2), 523264   ;;  %vm5049_vm5 = vmmov (!%p263_p2), 0   ;;  %v5050_v53 = vmov (!%p263_p2), 0.0  }
   0x8   : > { %4798 = vmatprep.subr.bf16.mxu0 (!%p263_p2), %v4797_v3  ;;  %v4832_v11 = vpack.c.bf16 (!%p263_p2), %v3533_v8, %v3532_v7  ;;  %v4835_v44 = vpack.c.bf16 (!%p263_p2), %v3535_v43, %v3534_v42  ;;  %v3536_v45 = vld [vmem:[%s6428_s3 + $0xa0] sm:$0xff] (!%p263_p2)  ;;  %v3537_v46 = vld [vmem:[%s6428_s3 + $0xa8] sm:$0xff] (!%p263_p2)  ;;  %v3538_v48 = vld [vmem:[%s6428_s3 + $0xb0] sm:$0xff] (!%p263_p2)  ;;  %2091 = vst.msk [vmem:[#allocation3] sm:$0xff] (!%p263_p2), %vm707_vm4, %v5050_v53  ;;  %4147 = vmatprep.mubr.msk.f32.mxu1 (!%p263_p2), %vm5049_vm5, %v5050_v53  ;;  %vm2101_vm6 = vcmask (!%p263_p2), 516096   ;;  %vm3405_vm7 = vcmask (!%p263_p2), 23552  }
   0x9   : > { %4800 = vmatpush3.bf16.msra.mxu0 (!%p263_p2), %v4797_v3  ;;  %v4838_v47 = vpack.c.bf16 (!%p263_p2), %v3537_v46, %v3536_v45  ;;  %v3539_v49 = vld [vmem:[%s6428_s3 + $0xb8] sm:$0xff] (!%p263_p2)  ;;  %v3510_v51 = vld [vmem:[%s6428_s3 + $0x40] sm:$0xff] (!%p263_p2)  ;;  %v3511_v52 = vld [vmem:[%s6428_s3 + $0x48] sm:$0xff] (!%p263_p2)  ;;  %2092 = vst.msk [vmem:[#allocation3 + $0x8] sm:$0xff] (!%p263_p2), %vm707_vm4, %v5050_v53 }
   0xa   : > { %4803 = vmatprep.subr.msk.bf16.mxu0 (!%p263_p2), %vm4802_vm2, %v4801_v5  ;;  %v4841_v50 = vpack.c.bf16 (!%p263_p2), %v3539_v49, %v3538_v48  ;;  %2093 = vst.msk [vmem:[#allocation3 + $0x10] sm:$0xff] (!%p263_p2), %vm707_vm4, %v5050_v53  ;;  %2094 = vst.msk [vmem:[#allocation3 + $0x18] sm:$0xff] (!%p263_p2), %vm707_vm4, %v5050_v53  ;;  %v4808_v54 = vpack.c.bf16 (!%p263_p2), %v3511_v52, %v3510_v51  ;;  %v3512_v55 = vld [vmem:[%s6428_s3 + $0x50] sm:$0xff] (!%p263_p2)  ;;  %v3513_v56 = vld [vmem:[%s6428_s3 + $0x58] sm:$0xff] (!%p263_p2) }
   0xb   : > { %2095 = vst.msk [vmem:[#allocation3 + $0x20] sm:$0xff] (!%p263_p2), %vm707_vm4, %v5050_v53  ;;  %2096 = vst.msk [vmem:[#allocation3 + $0x28] sm:$0xff] (!%p263_p2), %vm707_vm4, %v5050_v53  ;;  %v4811_v57 = vpack.c.bf16 (!%p263_p2), %v3513_v56, %v3512_v55  ;;  %v3514_v58 = vld [vmem:[%s6428_s3 + $0x60] sm:$0xff] (!%p263_p2)  ;;  %v3515_v59 = vld [vmem:[%s6428_s3 + $0x68] sm:$0xff] (!%p263_p2) }
   0xc   : > { %2097 = vst.msk [vmem:[#allocation3 + $0x30] sm:$0xff] (!%p263_p2), %vm707_vm4, %v5050_v53  ;;  %2098 = vst.msk [vmem:[#allocation3 + $0x38] sm:$0xff] (!%p263_p2), %vm707_vm4, %v5050_v53  ;;  %4809 = vmatpush3.bf16.msra.mxu1 (!%p263_p2), %v4808_v54  ;;  %v4814_v60 = vpack.c.bf16 (!%p263_p2), %v3515_v59, %v3514_v58  ;;  %v3516_v61 = vld [vmem:[%s6428_s3 + $0x70] sm:$0xff] (!%p263_p2)  ;;  %v3517_v62 = vld [vmem:[%s6428_s3 + $0x78] sm:$0xff] (!%p263_p2) }
   0xd   : > { %s6435_s28 = smov (!%p296_p3, %s3468_s28), 1  ;;  %4806 = vmatpush3.bf16.msk.msra.mxu0 %vm4802_vm2, %v4801_v5  ;;  %2099 = vst.msk [vmem:[#allocation3 + $0x40] sm:$0xff] %vm707_vm4, %v5050_v53  ;;  %2100 = vst.msk [vmem:[#allocation3 + $0x48] sm:$0xff] %vm707_vm4, %v5050_v53  ;;  %4810 = vmatprep.subr.bf16.mxu1 %v5048_v6  ;;  %v4817_v63 = vpack.c.bf16 %v3517_v62, %v3516_v61  ;;  %v5274_v0 = vld [vmem:[%s6427_s2] ss:$0 sm:$0xff]  ;;  %v3569_v45 = vld [vmem:[%s6428_s3 + $0x138] sm:$0xff] }
   0xe   : > { %s3768_s15 = sshll.u32 %s6435_s28, 8  ;;  %4831 = vmatprep.subr.bf16.mxu0 %v5048_v6  ;;  %v747_v54 = vld [vmem:[%s6428_s3] sm:$0xff]  ;;  %v748_v55 = vld [vmem:[%s6428_s3 + $0x8] sm:$0xff]  ;;  %2102 = vst.msk [vmem:[#allocation3 + $0x50] sm:$0x1] %vm2101_vm6, %v5050_v53  ;;  %s5023_s25 = smul.u32 56, %s6435_s28 }
   0xf   : > { %s5124_s18 = scalar_lea.vmem %s6425_s0, %s3768_s15  ;;  %v4820_v61 = vpack.c.bf16 %v748_v55, %v747_v54 }
  0x10   : > { %v306_v9 = vld [vmem:[%s5124_s18] sm:$0xff]  ;;  %v307_v10 = vld [vmem:[%s5124_s18 + $0x8] sm:$0xff]  ;;  %v308_v12 = vld [vmem:[%s5124_s18 + $0x10] sm:$0xff]  ;;  %4812 = vmatpush3.bf16.msra.mxu1 %v4811_v57  ;;  %s6406_s10 = scalar_lea.vmem %s6433_s8, %s5023_s25 }
  0x11   : > { %4083 = vmatprep.mubr.msk.f32.mxu0 %vm349_vm3, %v306_v9  ;;  %v309_v13 = vld [vmem:[%s5124_s18 + $0x18] sm:$0xff]  ;;  %v310_v14 = vld [vmem:[%s5124_s18 + $0x20] sm:$0xff]  ;;  %v311_v15 = vld [vmem:[%s5124_s18 + $0x28] sm:$0xff]  ;;  %4813 = vmatprep.subr.bf16.mxu1 %v5048_v6 }
  0x12   : > { %4084 = vmatmul.mubr.msk.f32.vlgmr.msra.gmra.mrb[0].mxu0 %vm349_vm3, %v307_v10  ;;  %v312_v16 = vld [vmem:[%s5124_s18 + $0x30] sm:$0xff]  ;;  %v313_v17 = vld [vmem:[%s5124_s18 + $0x38] sm:$0xff]  ;;  %v314_v18 = vld [vmem:[%s5124_s18 + $0x40] sm:$0xff] }
  0x13   : > { %4086 = vmatprep.mubr.msk.f32.mxu0 %vm349_vm3, %v308_v12  ;;  %4833 = vmatpush3.bf16.msra.mxu0 %v4832_v11  ;;  %v315_v19 = vld [vmem:[%s5124_s18 + $0x48] sm:$0xff]  ;;  %v316_v20 = vld [vmem:[%s5124_s18 + $0x50] sm:$0xff]  ;;  %v317_v21 = vld [vmem:[%s5124_s18 + $0x58] sm:$0xff] }
  0x14   : > { %4834 = vmatprep.subr.bf16.mxu0 %v5048_v6  ;;  %v318_v22 = vld [vmem:[%s5124_s18 + $0x60] sm:$0xff]  ;;  %v319_v23 = vld [vmem:[%s5124_s18 + $0x68] sm:$0xff]  ;;  %v320_v24 = vld [vmem:[%s5124_s18 + $0x70] sm:$0xff]  ;;  %4815 = vmatpush3.bf16.msra.mxu1 %v4814_v60 }
  0x15   : > { %v321_v25 = vld [vmem:[%s5124_s18 + $0x78] sm:$0xff]  ;;  %v322_v26 = vld [vmem:[%s5124_s18 + $0x80] sm:$0xff]  ;;  %v323_v27 = vld [vmem:[%s5124_s18 + $0x88] sm:$0xff]  ;;  %4816 = vmatprep.subr.bf16.mxu1 %v5048_v6 }
  0x16   : > { %4087 = vmatmul.mubr.msk.f32.gmra.mrb[2].mxu0 %vm349_vm3, %v309_v13  ;;  %v324_v28 = vld [vmem:[%s5124_s18 + $0x90] sm:$0xff]  ;;  %v325_v29 = vld [vmem:[%s5124_s18 + $0x98] sm:$0xff]  ;;  %v326_v30 = vld [vmem:[%s5124_s18 + $0xa0] sm:$0xff] }
  0x17   : > { %4089 = vmatprep.mubr.msk.f32.mxu0 %vm349_vm3, %v310_v14  ;;  %v327_v31 = vld [vmem:[%s5124_s18 + $0xa8] sm:$0xff]  ;;  %v328_v32 = vld [vmem:[%s5124_s18 + $0xb0] sm:$0xff]  ;;  %v329_v33 = vld [vmem:[%s5124_s18 + $0xb8] sm:$0xff]  ;;  %4836 = vmatpush3.bf16.msra.mxu0 %v4835_v44 }
  0x18   : > { %v330_v34 = vld [vmem:[%s5124_s18 + $0xc0] sm:$0xff]  ;;  %v331_v35 = vld [vmem:[%s5124_s18 + $0xc8] sm:$0xff]  ;;  %v332_v36 = vld [vmem:[%s5124_s18 + $0xd0] sm:$0xff]  ;;  %4837 = vmatprep.subr.bf16.mxu0 %v5048_v6  ;;  %4818 = vmatpush3.bf16.msra.mxu1 %v4817_v63 }
  0x19   : > { %v333_v37 = vld [vmem:[%s5124_s18 + $0xd8] sm:$0xff]  ;;  %v334_v38 = vld [vmem:[%s5124_s18 + $0xe0] sm:$0xff]  ;;  %v335_v39 = vld [vmem:[%s5124_s18 + $0xe8] sm:$0xff]  ;;  %4819 = vmatprep.subr.bf16.mxu1 %v5048_v6 }
  0x1a   : > { %4090 = vmatmul.mubr.msk.f32.gmra.mrb[4].mxu0 %vm349_vm3, %v311_v15  ;;  %v336_v40 = vld [vmem:[%s5124_s18 + $0xf0] sm:$0xff]  ;;  %v337_v41 = vld [vmem:[%s5124_s18 + $0xf8] sm:$0xff]  ;;  %v3562_v15 = vld [vmem:[%s6428_s3 + $0x100] sm:$0xff] }
  0x1b   : > { %4092 = vmatprep.mubr.msk.f32.mxu0 %vm349_vm3, %v312_v16  ;;  %4839 = vmatpush3.bf16.msra.mxu0 %v4838_v47  ;;  %v3563_v16 = vld [vmem:[%s6428_s3 + $0x108] sm:$0xff]  ;;  %v3568_v44 = vld [vmem:[%s6428_s3 + $0x130] sm:$0xff] }
  0x1c   : > { %4840 = vmatprep.subr.bf16.mxu0 %v5048_v6  ;;  %v4865_v51 = vpack.c.bf16 %v3569_v45, %v3568_v44 }
  0x1e   : > { %4093 = vmatmul.mubr.msk.f32.gmra.mrb[6].mxu0 %vm349_vm3, %v313_v17 }
  0x1f   : > { %4095 = vmatprep.mubr.msk.f32.mxu0 %vm349_vm3, %v314_v18  ;;  %4842 = vmatpush3.bf16.msra.mxu0 %v4841_v50 }
  0x20   : > { %4855 = vmatprep.subr.bf16.mxu0 %v5048_v6 }
  0x22   : > { %4096 = vmatmul.mubr.msk.f32.gmra.mrb[8].mxu0 %vm349_vm3, %v315_v19 }
  0x23   : > { %4098 = vmatprep.mubr.msk.f32.mxu0 %vm349_vm3, %v316_v20 }
  0x26   : > { %4099 = vmatmul.mubr.msk.f32.gmra.mrb[10].mxu0 %vm349_vm3, %v317_v21  ;;  %v4856_v21 = vpack.c.bf16 %v3563_v16, %v3562_v15  ;;  %v752_v15 = vld [vmem:[%s6428_s3 + $0x28] sm:$0xff] }
  0x27   : > { %4101 = vmatprep.mubr.msk.f32.mxu0 %vm349_vm3, %v318_v22 }
  0x2a   : > { %4102 = vmatmul.mubr.msk.f32.gmra.mrb[12].mxu0 %vm349_vm3, %v319_v23 }
  0x2b   : > { %4104 = vmatprep.mubr.msk.f32.mxu0 %vm349_vm3, %v320_v24  ;;  %v3564_v24 = vld [vmem:[%s6428_s3 + $0x110] sm:$0xff] }
  0x2e   : > { %4105 = vmatmul.mubr.msk.f32.gmra.mrb[14].mxu0 %vm349_vm3, %v321_v25  ;;  %v3565_v25 = vld [vmem:[%s6428_s3 + $0x118] sm:$0xff] }
  0x2f   : > { %4107 = vmatprep.mubr.msk.f32.mxu0 %vm349_vm3, %v322_v26 }
  0x32   : > { %4108 = vmatmul.mubr.msk.f32.gmra.mrb[16].mxu0 %vm349_vm3, %v323_v27 }
  0x33   : > { %4110 = vmatprep.mubr.msk.f32.mxu0 %vm349_vm3, %v324_v28 }
  0x36   : > { %4111 = vmatmul.mubr.msk.f32.gmra.mrb[18].mxu0 %vm349_vm3, %v325_v29 }
  0x37   : > { %4113 = vmatprep.mubr.msk.f32.mxu0 %vm349_vm3, %v326_v30 }
  0x3a   : > { %4114 = vmatmul.mubr.msk.f32.gmra.mrb[20].mxu0 %vm349_vm3, %v327_v31  ;;  %v4859_v31 = vpack.c.bf16 %v3565_v25, %v3564_v24 }
  0x3b   : > { %4116 = vmatprep.mubr.msk.f32.mxu0 %vm349_vm3, %v328_v32 }
  0x3e   : > { %4117 = vmatmul.mubr.msk.f32.gmra.mrb[22].mxu0 %vm349_vm3, %v329_v33 }
  0x3f   : > { %4119 = vmatprep.mubr.msk.f32.mxu0 %vm349_vm3, %v330_v34  ;;  %v3566_v34 = vld [vmem:[%s6428_s3 + $0x120] sm:$0xff] }
  0x42   : > { %4120 = vmatmul.mubr.msk.f32.gmra.mrb[24].mxu0 %vm349_vm3, %v331_v35  ;;  %v3567_v35 = vld [vmem:[%s6428_s3 + $0x128] sm:$0xff] }
  0x43   : > { %4122 = vmatprep.mubr.msk.f32.mxu0 %vm349_vm3, %v332_v36 }
  0x46   : > { %4123 = vmatmul.mubr.msk.f32.gmra.mrb[26].mxu0 %vm349_vm3, %v333_v37 }
  0x47   : > { %4125 = vmatprep.mubr.msk.f32.mxu0 %vm349_vm3, %v334_v38 }
  0x4a   : > { %4126 = vmatmul.mubr.msk.f32.gmra.mrb[28].mxu0 %vm349_vm3, %v335_v39 }
  0x4b   : > { %4128 = vmatprep.mubr.msk.f32.mxu0 %vm349_vm3, %v336_v40 }
  0x4e   : > { %4129 = vmatmul.mubr.msk.f32.gmra.mrb[30].mxu0 %vm349_vm3, %v337_v41  ;;  %v4862_v41 = vpack.c.bf16 %v3567_v35, %v3566_v34  ;;  %v2042_v34 = vld [vmem:[%s6430_s5] sm:$0xff] }
  0x4f   : > { %4221 = vmatprep.mubr.msk.f32.mxu0 %vm5049_vm5, %v5050_v53 }
  0xe5   : > { %v4085_v1 = vpop.f32.mrb[0].mxu0 }
  0xe6   : > { %v522_v2 = vadd.f32 %v4085_v1, %v5274_v0  ;;  %v516_v3 = vpop.f32.mrb[1].mxu0  ;;  %v749_v1 = vld [vmem:[%s6428_s3 + $0x10] sm:$0xff] }
  0xe7   : > { %v517_v4 = vadd.f32 %v5274_v0, %v516_v3 }
  0xe8   : > { %v676_v5 = vmax.f32 %v522_v2, 0.0  ;;  %v750_v2 = vld [vmem:[%s6428_s3 + $0x18] sm:$0xff] }
  0xe9   : > { %v675_v7 = vmax.f32 %v517_v4, 0.0  ;;  %v4088_v8 = vpop.f32.mrb[2].mxu0 }
  0xea   : > { %709 = vst.msk [vmem:[#allocation2 + $0x8] sm:$0xff] %vm707_vm4, %v676_v5  ;;  %v532_v9 = vadd.f32 %v4088_v8, %v5274_v0  ;;  %v526_v10 = vpop.f32.mrb[3].mxu0 }
  0xeb   : > { %708 = vst.msk [vmem:[#allocation2] sm:$0xff] %vm707_vm4, %v675_v7  ;;  %v527_v11 = vadd.f32 %v5274_v0, %v526_v10  ;;  %v4823_v10 = vpack.c.bf16 %v750_v2, %v749_v1  ;;  %v3547_v1 = vld [vmem:[%s6428_s3 + $0xc0] sm:$0xff]  ;;  %v3548_v2 = vld [vmem:[%s6428_s3 + $0xc8] sm:$0xff] }
  0xec   : > { %v678_v12 = vmax.f32 %v532_v9, 0.0 }
  0xed   : > { %v677_v13 = vmax.f32 %v527_v11, 0.0  ;;  %v4091_v14 = vpop.f32.mrb[4].mxu0 }
  0xee   : > { %711 = vst.msk [vmem:[#allocation2 + $0x18] sm:$0xff] %vm707_vm4, %v678_v12  ;;  %v542_v17 = vadd.f32 %v4091_v14, %v5274_v0  ;;  %v536_v18 = vpop.f32.mrb[5].mxu0  ;;  %v751_v14 = vld [vmem:[%s6428_s3 + $0x20] sm:$0xff] }
  0xef   : > { %710 = vst.msk [vmem:[#allocation2 + $0x10] sm:$0xff] %vm707_vm4, %v677_v13  ;;  %v537_v19 = vadd.f32 %v5274_v0, %v536_v18 }
  0xf0   : > { %v680_v20 = vmax.f32 %v542_v17, 0.0 }
  0xf1   : > { %v679_v22 = vmax.f32 %v537_v19, 0.0  ;;  %v4094_v23 = vpop.f32.mrb[6].mxu0 }
  0xf2   : > { %713 = vst.msk [vmem:[#allocation2 + $0x28] sm:$0xff] %vm707_vm4, %v680_v20  ;;  %v552_v26 = vadd.f32 %v4094_v23, %v5274_v0  ;;  %v546_v27 = vpop.f32.mrb[7].mxu0  ;;  %v1013_v28 = vld [vmem:[#allocation2 + $0x1] sm:$0xff]  ;;  %v4826_v23 = vpack.c.bf16 %v752_v15, %v751_v14 }
  0xf3   : > { %712 = vst.msk [vmem:[#allocation2 + $0x20] sm:$0xff] %vm707_vm4, %v679_v22  ;;  %v547_v29 = vadd.f32 %v5274_v0, %v546_v27  ;;  %4222 = vmatmul.mubr.msk.f32.vlgmr.msra.gmra.mrb[32].mxu0 %vm707_vm4, %v1013_v28  ;;  %v754_v27 = vld [vmem:[%s6428_s3 + $0x38] sm:$0xff]  ;;  %v740_v14 = vld [vmem:[#allocation2] sm:$0xff] }
  0xf4   : > { %v682_v30 = vmax.f32 %v552_v26, 0.0  ;;  %4224 = vmatprep.mubr.msk.f32.mxu0 %vm5049_vm5, %v5050_v53  ;;  %4857 = vmatpush3.bf16.msra.mxu0 %v4856_v21  ;;  %v753_v26 = vld [vmem:[%s6428_s3 + $0x30] sm:$0xff] }
  0xf5   : > { %v681_v32 = vmax.f32 %v547_v29, 0.0  ;;  %v4097_v33 = vpop.f32.mrb[8].mxu0  ;;  %4858 = vmatprep.subr.bf16.mxu0 %v5048_v6 }
  0xf6   : > { %715 = vst.msk [vmem:[#allocation2 + $0x38] sm:$0xff] %vm707_vm4, %v682_v30  ;;  %v562_v36 = vadd.f32 %v4097_v33, %v5274_v0  ;;  %v556_v37 = vpop.f32.mrb[9].mxu0  ;;  %v5314_v38 = vld [vmem:[#allocation2 + $0x9] sm:$0xff]  ;;  %v5330_v46 = vld [vmem:[#allocation2 + $0x11] sm:$0xff]  ;;  %v4829_v33 = vpack.c.bf16 %v754_v27, %v753_v26  ;;  %v3551_v27 = vld [vmem:[%s6428_s3 + $0xe0] sm:$0xff] }
  0xf7   : > { %714 = vst.msk [vmem:[#allocation2 + $0x30] sm:$0xff] %vm707_vm4, %v681_v32  ;;  %v557_v39 = vadd.f32 %v5274_v0, %v556_v37  ;;  %4225 = vmatmul.mubr.msk.f32.gmra.mrb[34].mxu0 %vm707_vm4, %v5314_v38 }
  0xf8   : > { %v684_v40 = vmax.f32 %v562_v36, 0.0  ;;  %4227 = vmatprep.mubr.msk.f32.mxu0 %vm5049_vm5, %v5050_v53  ;;  %4860 = vmatpush3.bf16.msra.mxu0 %v4859_v31 }
  0xf9   : > { %v683_v42 = vmax.f32 %v557_v39, 0.0  ;;  %v4100_v43 = vpop.f32.mrb[10].mxu0  ;;  %4861 = vmatprep.subr.bf16.mxu0 %v5048_v6 }
  0xfa   : > { %717 = vst.msk [vmem:[#allocation2 + $0x48] sm:$0xff] %vm707_vm4, %v684_v40  ;;  %v572_v47 = vadd.f32 %v4100_v43, %v5274_v0  ;;  %v566_v48 = vpop.f32.mrb[11].mxu0  ;;  %v5347_v57 = vld [vmem:[#allocation2 + $0x19] sm:$0xff]  ;;  %v5363_v5 = vld [vmem:[#allocation2 + $0x21] sm:$0xff] }
  0xfb   : > { %716 = vst.msk [vmem:[#allocation2 + $0x40] sm:$0xff] %vm707_vm4, %v683_v42  ;;  %4228 = vmatmul.mubr.msk.f32.gmra.mrb[36].mxu0 %vm707_vm4, %v5330_v46  ;;  %v567_v49 = vadd.f32 %v5274_v0, %v566_v48 }
  0xfc   : > { %v686_v50 = vmax.f32 %v572_v47, 0.0  ;;  %4230 = vmatprep.mubr.msk.f32.mxu0 %vm5049_vm5, %v5050_v53  ;;  %4863 = vmatpush3.bf16.msra.mxu0 %v4862_v41  ;;  %v5051_v41 = vmov 0  }
  0xfd   : > { %v685_v52 = vmax.f32 %v567_v49, 0.0  ;;  %v4103_v56 = vpop.f32.mrb[12].mxu0  ;;  %4864 = vmatprep.subr.bf16.mxu0 %v5048_v6  ;;  %5037 = vset.pattern.permute.xlu0 %v5051_v41 }
  0xfe   : > { %719 = vst.msk [vmem:[#allocation2 + $0x58] sm:$0xff] %vm707_vm4, %v686_v50  ;;  %v582_v58 = vadd.f32 %v4103_v56, %v5274_v0  ;;  %v576_v59 = vpop.f32.mrb[13].mxu0  ;;  %v5385_v17 = vld [vmem:[#allocation2 + $0x29] sm:$0xff]  ;;  %v5408_v28 = vld [vmem:[#allocation2 + $0x31] sm:$0xff]  ;;  %5038 = vset.pattern.permute.xlu1 %v5051_v41  ;;  %2051 = vperm.xlu0 %5037, %v2042_v34  }
  0xff   : > { %718 = vst.msk [vmem:[#allocation2 + $0x50] sm:$0xff] %vm707_vm4, %v685_v52  ;;  %4231 = vmatmul.mubr.msk.f32.gmra.mrb[38].mxu0 %vm707_vm4, %v5347_v57  ;;  %v577_v60 = vadd.f32 %v5274_v0, %v576_v59  ;;  %v5518_v41 = vld [vmem:[#allocation2 + $0x10] sm:$0xff] }
 0x100   : > { %4233 = vmatprep.mubr.msk.f32.mxu0 %vm5049_vm5, %v5050_v53  ;;  %v688_v62 = vmax.f32 %v582_v58, 0.0  ;;  %4866 = vmatpush3.bf16.msra.mxu0 %v4865_v51 }
 0x101   : > { %v687_v63 = vmax.f32 %v577_v60, 0.0  ;;  %v4106_v3 = vpop.f32.mrb[14].mxu0  ;;  %4879 = vmatprep.subr.bf16.mxu0 %v5048_v6  ;;  %v5383_v16 = vld [vmem:[#allocation2 + $0x48] sm:$0xff] }
 0x102   : > { %v755_v4 = vld [vmem:[#allocation2 + $0x40] sm:$0xff]  ;;  %721 = vst.msk [vmem:[#allocation2 + $0x68] sm:$0xff] %vm707_vm4, %v688_v62  ;;  %v592_v7 = vadd.f32 %v4106_v3, %v5274_v0  ;;  %v586_v8 = vpop.f32.mrb[15].mxu0 }
 0x103   : > { %4148 = vmatmul.mubr.msk.f32.vlgmr.msra.gmra.mrb[0].mxu1 %vm707_vm4, %v755_v4  ;;  %4234 = vmatmul.mubr.msk.f32.gmra.mrb[40].mxu0 %vm707_vm4, %v5363_v5  ;;  %720 = vst.msk [vmem:[#allocation2 + $0x60] sm:$0xff] %vm707_vm4, %v687_v63  ;;  %v587_v9 = vadd.f32 %v5274_v0, %v586_v8 }
 0x104   : > { %4821 = vmatpush3.bf16.msra.mxu1 %v4820_v61  ;;  %4150 = vmatprep.mubr.msk.f32.mxu1 %vm5049_vm5, %v5050_v53  ;;  %v690_v11 = vmax.f32 %v592_v7, 0.0 }
 0x105   : > { %4236 = vmatprep.mubr.msk.f32.mxu0 %vm5049_vm5, %v5050_v53  ;;  %4822 = vmatprep.subr.bf16.mxu1 %v5048_v6  ;;  %v689_v12 = vmax.f32 %v587_v9, 0.0  ;;  %v4109_v13 = vpop.f32.mrb[16].mxu0  ;;  %v5427_v37 = vld [vmem:[#allocation2 + $0x58] sm:$0xff]  ;;  %v4844_v9 = vpack.c.bf16 %v3548_v2, %v3547_v1  ;;  %v3577_v2 = vld [vmem:[%s6428_s3 + $0x140] sm:$0xff] }
 0x106   : > { %723 = vst.msk [vmem:[#allocation2 + $0x78] sm:$0xff] %vm707_vm4, %v690_v11  ;;  %v602_v18 = vadd.f32 %v4109_v13, %v5274_v0  ;;  %v596_v19 = vpop.f32.mrb[17].mxu0  ;;  %v5397_v21 = vld [vmem:[#allocation2 + $0x50] sm:$0xff]  ;;  %v3550_v13 = vld [vmem:[%s6428_s3 + $0xd8] sm:$0xff] }
 0x107   : > { %4151 = vmatmul.mubr.msk.f32.gmra.mrb[2].mxu1 %vm707_vm4, %v5383_v16  ;;  %4237 = vmatmul.mubr.msk.f32.gmra.mrb[42].mxu0 %vm707_vm4, %v5385_v17  ;;  %722 = vst.msk [vmem:[#allocation2 + $0x70] sm:$0xff] %vm707_vm4, %v689_v12  ;;  %v597_v20 = vadd.f32 %v5274_v0, %v596_v19  ;;  %v3549_v12 = vld [vmem:[%s6428_s3 + $0xd0] sm:$0xff] }
 0x108   : > { %4153 = vmatprep.mubr.msk.f32.mxu1 %vm5049_vm5, %v5050_v53  ;;  %4824 = vmatpush3.bf16.msra.mxu1 %v4823_v10  ;;  %v692_v22 = vmax.f32 %v602_v18, 0.0 }
 0x109   : > { %4239 = vmatprep.mubr.msk.f32.mxu0 %vm5049_vm5, %v5050_v53  ;;  %v691_v24 = vmax.f32 %v597_v20, 0.0  ;;  %v4112_v25 = vpop.f32.mrb[18].mxu0  ;;  %4825 = vmatprep.subr.bf16.mxu1 %v5048_v6  ;;  %v5449_v58 = vld [vmem:[#allocation2 + $0x68] sm:$0xff]  ;;  %v3592_v20 = vld [vmem:[%s6428_s3 + $0x180] sm:$0xff] }
 0x10a   : > { %725 = vst.msk [vmem:[#allocation2 + $0x88] sm:$0xff] %vm707_vm4, %v692_v22  ;;  %v612_v29 = vadd.f32 %v4112_v25, %v5274_v0  ;;  %v606_v30 = vpop.f32.mrb[19].mxu0  ;;  %v5436_v44 = vld [vmem:[#allocation2 + $0x60] sm:$0xff]  ;;  %v3593_v22 = vld [vmem:[%s6428_s3 + $0x188] sm:$0xff] }
 0x10b   : > { %4154 = vmatmul.mubr.msk.f32.gmra.mrb[4].mxu1 %vm707_vm4, %v5397_v21  ;;  %4240 = vmatmul.mubr.msk.f32.gmra.mrb[44].mxu0 %vm707_vm4, %v5408_v28  ;;  %724 = vst.msk [vmem:[#allocation2 + $0x80] sm:$0xff] %vm707_vm4, %v691_v24  ;;  %v607_v31 = vadd.f32 %v5274_v0, %v606_v30  ;;  %v4847_v24 = vpack.c.bf16 %v3550_v13, %v3549_v12  ;;  %v3622_v12 = vld [vmem:[%s6428_s3 + $0x200] sm:$0xff]  ;;  %v3623_v13 = vld [vmem:[%s6428_s3 + $0x208] sm:$0xff] }
 0x10c   : > { %4156 = vmatprep.mubr.msk.f32.mxu1 %vm5049_vm5, %v5050_v53  ;;  %v694_v32 = vmax.f32 %v612_v29, 0.0  ;;  %4827 = vmatpush3.bf16.msra.mxu1 %v4826_v23  ;;  %v5496_v29 = vld [vmem:[#allocation2 + $0x8] sm:$0xff] }
 0x10d   : > { %v693_v35 = vmax.f32 %v607_v31, 0.0  ;;  %v4115_v36 = vpop.f32.mrb[20].mxu0  ;;  %4828 = vmatprep.subr.bf16.mxu1 %v5048_v6  ;;  %4295 = vmatprep.mubr.msk.f32.mxu0 %vm5049_vm5, %v5050_v53  ;;  %v3552_v31 = vld [vmem:[%s6428_s3 + $0xe8] sm:$0xff] }
 0x10e   : > { %727 = vst.msk [vmem:[#allocation2 + $0x98] sm:$0xff] %vm707_vm4, %v694_v32  ;;  %v622_v39 = vadd.f32 %v4115_v36, %v5274_v0  ;;  %v616_v40 = vpop.f32.mrb[21].mxu0  ;;  %v5457_v61 = vld [vmem:[#allocation2 + $0x70] sm:$0xff]  ;;  %v3595_v36 = vld [vmem:[%s6428_s3 + $0x198] sm:$0xff] }
 0x10f   : > { %4157 = vmatmul.mubr.msk.f32.gmra.mrb[6].mxu1 %vm707_vm4, %v5427_v37  ;;  %726 = vst.msk [vmem:[#allocation2 + $0x90] sm:$0xff] %vm707_vm4, %v693_v35  ;;  %v617_v42 = vadd.f32 %v5274_v0, %v616_v40  ;;  %v3594_v35 = vld [vmem:[%s6428_s3 + $0x190] sm:$0xff]  ;;  %v4850_v40 = vpack.c.bf16 %v3552_v31, %v3551_v27  ;;  %v3584_v27 = vld [vmem:[%s6428_s3 + $0x178] sm:$0xff]  ;;  %v3627_v31 = vld [vmem:[%s6428_s3 + $0x228] sm:$0xff] }
 0x110   : > { %v696_v43 = vmax.f32 %v622_v39, 0.0  ;;  %4159 = vmatprep.mubr.msk.f32.mxu1 %vm5049_vm5, %v5050_v53  ;;  %4830 = vmatpush3.bf16.msra.mxu1 %v4829_v33  ;;  %v4880_v33 = vpack.c.bf16 %v3593_v22, %v3592_v20  ;;  %v4904_v20 = vpack.c.bf16 %v3623_v13, %v3622_v12  ;;  %v3624_v22 = vld [vmem:[%s6428_s3 + $0x210] sm:$0xff] }
 0x111   : > { %v695_v45 = vmax.f32 %v617_v42, 0.0  ;;  %v4118_v47 = vpop.f32.mrb[22].mxu0  ;;  %4843 = vmatprep.subr.bf16.mxu1 %v5048_v6  ;;  %v3553_v42 = vld [vmem:[%s6428_s3 + $0xf0] sm:$0xff] }
 0x112   : > { %729 = vst.msk [vmem:[#allocation2 + $0xa8] sm:$0xff] %vm707_vm4, %v696_v43  ;;  %v632_v48 = vadd.f32 %v4118_v47, %v5274_v0  ;;  %v626_v49 = vpop.f32.mrb[23].mxu0  ;;  %v3554_v43 = vld [vmem:[%s6428_s3 + $0xf8] sm:$0xff]  ;;  %v3596_v47 = vld [vmem:[%s6428_s3 + $0x1a0] sm:$0xff] }
 0x113   : > { %728 = vst.msk [vmem:[#allocation2 + $0xa0] sm:$0xff] %vm707_vm4, %v695_v45  ;;  %4160 = vmatmul.mubr.msk.f32.gmra.mrb[8].mxu1 %vm707_vm4, %v5436_v44  ;;  %v627_v50 = vadd.f32 %v5274_v0, %v626_v49  ;;  %v4883_v45 = vpack.c.bf16 %v3595_v36, %v3594_v35  ;;  %v3628_v35 = vld [vmem:[%s6428_s3 + $0x230] sm:$0xff]  ;;  %v3629_v36 = vld [vmem:[%s6428_s3 + $0x238] sm:$0xff] }
 0x114   : > { %v698_v51 = vmax.f32 %v632_v48, 0.0  ;;  %4162 = vmatprep.mubr.msk.f32.mxu1 %vm5049_vm5, %v5050_v53  ;;  %v3597_v48 = vld [vmem:[%s6428_s3 + $0x1a8] sm:$0xff] }
 0x115   : > { %v697_v52 = vmax.f32 %v627_v50, 0.0  ;;  %v4121_v54 = vpop.f32.mrb[24].mxu0  ;;  %v4853_v50 = vpack.c.bf16 %v3554_v43, %v3553_v42  ;;  %v2046_v42 = vld [vmem:[%s6430_s5 + $0x20] sm:$0xff]  ;;  %v2044_v43 = vld [vmem:[%s6430_s5 + $0x10] sm:$0xff] }
 0x116   : > { %731 = vst.msk [vmem:[#allocation2 + $0xb8] sm:$0xff] %vm707_vm4, %v698_v51  ;;  %v642_v55 = vadd.f32 %v4121_v54, %v5274_v0  ;;  %v636_v56 = vpop.f32.mrb[25].mxu0  ;;  %v5541_v51 = vld [vmem:[#allocation2 + $0x18] sm:$0xff]  ;;  %v3598_v54 = vld [vmem:[%s6428_s3 + $0x1b0] sm:$0xff]  ;;  %2061 = vperm.xlu1 %5038, %v2044_v43  }
 0x117   : > { %730 = vst.msk [vmem:[#allocation2 + $0xb0] sm:$0xff] %vm707_vm4, %v697_v52  ;;  %v637_v59 = vadd.f32 %v5274_v0, %v636_v56  ;;  %4163 = vmatmul.mubr.msk.f32.gmra.mrb[10].mxu1 %vm707_vm4, %v5449_v58  ;;  %v4886_v52 = vpack.c.bf16 %v3597_v48, %v3596_v47  ;;  %v3608_v47 = vld [vmem:[%s6428_s3 + $0x1c8] sm:$0xff] }
 0x118   : > { %v700_v60 = vmax.f32 %v642_v55, 0.0  ;;  %4165 = vmatprep.mubr.msk.f32.mxu1 %vm5049_vm5, %v5050_v53  ;;  %v3599_v55 = vld [vmem:[%s6428_s3 + $0x1b8] sm:$0xff] }
 0x119   : > { %v699_v62 = vmax.f32 %v637_v59, 0.0  ;;  %v4124_v63 = vpop.f32.mrb[26].mxu0  ;;  %v5558_v59 = vld [vmem:[#allocation2 + $0x20] sm:$0xff] }
 0x11a   : > { %733 = vst.msk [vmem:[#allocation2 + $0xc8] sm:$0xff] %vm707_vm4, %v700_v60  ;;  %v652_v3 = vadd.f32 %v4124_v63, %v5274_v0  ;;  %v646_v4 = vpop.f32.mrb[27].mxu0  ;;  %v4889_v60 = vpack.c.bf16 %v3599_v55, %v3598_v54  ;;  %v5569_v63 = vld [vmem:[#allocation2 + $0x28] sm:$0xff]  ;;  %v3610_v54 = vld [vmem:[%s6428_s3 + $0x1d8] sm:$0xff] }
 0x11b   : > { %732 = vst.msk [vmem:[#allocation2 + $0xc0] sm:$0xff] %vm707_vm4, %v699_v62  ;;  %4166 = vmatmul.mubr.msk.f32.gmra.mrb[12].mxu1 %vm707_vm4, %v5457_v61  ;;  %v647_v7 = vadd.f32 %v5274_v0, %v646_v4  ;;  %v5585_v4 = vld [vmem:[#allocation2 + $0x30] sm:$0xff]  ;;  %v1445_v55 = vld [vmem:[#allocation2 + $0x81] sm:$0xff] }
 0x11c   : > { %v702_v8 = vmax.f32 %v652_v3, 0.0  ;;  %4184 = vmatprep.mubr.msk.f32.mxu1 %vm5049_vm5, %v5050_v53  ;;  %v3578_v3 = vld [vmem:[%s6428_s3 + $0x148] sm:$0xff] }
 0x11d   : > { %v701_v10 = vmax.f32 %v647_v7, 0.0  ;;  %v4127_v11 = vpop.f32.mrb[28].mxu0 }
 0x11e   : > { %735 = vst.msk [vmem:[#allocation2 + $0xd8] sm:$0xff] %vm707_vm4, %v702_v8  ;;  %v662_v15 = vadd.f32 %v4127_v11, %v5274_v0  ;;  %v656_v18 = vpop.f32.mrb[29].mxu0  ;;  %v4868_v8 = vpack.c.bf16 %v3578_v3, %v3577_v2  ;;  %v1157_v11 = vld [vmem:[#allocation2 + $0x80] sm:$0xff]  ;;  %v1163_v48 = vld [vmem:[#allocation2 + $0xb0] sm:$0xff] }
 0x11f   : > { %734 = vst.msk [vmem:[#allocation2 + $0xd0] sm:$0xff] %vm707_vm4, %v701_v10  ;;  %4185 = vmatmul.mubr.msk.f32.vlgmr.msra.gmra.mrb[14].mxu1 %vm707_vm4, %v740_v14  ;;  %v657_v19 = vadd.f32 %v5274_v0, %v656_v18  ;;  %v3580_v10 = vld [vmem:[%s6428_s3 + $0x158] sm:$0xff]  ;;  %v3581_v18 = vld [vmem:[%s6428_s3 + $0x160] sm:$0xff] }
 0x120   : > { %4845 = vmatpush3.bf16.msra.mxu1 %v4844_v9  ;;  %4187 = vmatprep.mubr.msk.f32.mxu1 %vm5049_vm5, %v5050_v53  ;;  %v704_v23 = vmax.f32 %v662_v15, 0.0  ;;  %v3579_v9 = vld [vmem:[%s6428_s3 + $0x150] sm:$0xff]  ;;  %v1158_v15 = vld [vmem:[#allocation2 + $0x88] sm:$0xff] }
 0x121   : > { %4846 = vmatprep.subr.bf16.mxu1 %v5048_v6  ;;  %v703_v25 = vmax.f32 %v657_v19, 0.0  ;;  %v4130_v26 = vpop.f32.mrb[30].mxu0  ;;  %v1302_v39 = vld [vmem:[#allocation2 + $0xc8] sm:$0xff]  ;;  %v4871_v14 = vpack.c.bf16 %v3580_v10, %v3579_v9  ;;  %v1447_v3 = vld [vmem:[#allocation2 + $0x91] sm:$0xff] }
 0x122   : > { %v1301_v30 = vld [vmem:[#allocation2 + $0xc0] sm:$0xff]  ;;  %737 = vst.msk [vmem:[#allocation2 + $0xe8] sm:$0xff] %vm707_vm4, %v704_v23  ;;  %v666_v32 = vpop.f32.mrb[31].mxu0  ;;  %v3582_v19 = vld [vmem:[%s6428_s3 + $0x168] sm:$0xff]  ;;  %v3625_v23 = vld [vmem:[%s6428_s3 + $0x218] sm:$0xff] }
 0x123   : > { %4188 = vmatmul.mubr.msk.f32.gmra.mrb[16].mxu1 %vm707_vm4, %v5496_v29  ;;  %4296 = vmatmul.mubr.msk.f32.vlgmr.msra.gmra.mrb[46].mxu0 %vm707_vm4, %v1301_v30  ;;  %736 = vst.msk [vmem:[#allocation2 + $0xe0] sm:$0xff] %vm707_vm4, %v703_v25  ;;  %v667_v34 = vadd.f32 %v5274_v0, %v666_v32  ;;  %v1159_v25 = vld [vmem:[#allocation2 + $0x90] sm:$0xff]  ;;  %v3626_v30 = vld [vmem:[%s6428_s3 + $0x220] sm:$0xff]  ;;  %v2118_v10 = vld [vmem:[%s6431_s6 + $0x8] sm:$0xff] }
 0x124   : > { %4190 = vmatprep.mubr.msk.f32.mxu1 %vm5049_vm5, %v5050_v53  ;;  %4848 = vmatpush3.bf16.msra.mxu1 %v4847_v24  ;;  %v4874_v24 = vpack.c.bf16 %v3582_v19, %v3581_v18  ;;  %v3583_v26 = vld [vmem:[%s6428_s3 + $0x170] sm:$0xff] }
 0x125   : > { %4298 = vmatprep.mubr.msk.f32.mxu0 %vm5049_vm5, %v5050_v53  ;;  %4849 = vmatprep.subr.bf16.mxu1 %v5048_v6  ;;  %v705_v0 = vmax.f32 %v667_v34, 0.0  ;;  %v1304_v56 = vld [vmem:[#allocation2 + $0xd8] sm:$0xff]  ;;  %v4877_v32 = vpack.c.bf16 %v3584_v27, %v3583_v26  ;;  %v4910_v34 = vpack.c.bf16 %v3627_v31, %v3626_v30  ;;  %v2122_v26 = vld [vmem:[%s6431_s6 + $0x28] sm:$0xff]  ;;  %v3644_v30 = vld [vmem:[%s6431_s6 + $0x70] sm:$0xff] }
 0x126   : > { %4881 = vmatpush3.bf16.msra.mxu0 %v4880_v33  ;;  %v1303_v49 = vld [vmem:[#allocation2 + $0xd0] sm:$0xff]  ;;  %v1160_v33 = vld [vmem:[#allocation2 + $0x98] sm:$0xff] }
 0x127   : > { %4191 = vmatmul.mubr.msk.f32.gmra.mrb[18].mxu1 %vm707_vm4, %v5518_v41  ;;  %4299 = vmatmul.mubr.msk.f32.gmra.mrb[48].mxu0 %vm707_vm4, %v1302_v39  ;;  %738 = vst.msk [vmem:[#allocation2 + $0xf0] sm:$0xff] %vm707_vm4, %v705_v0  ;;  %v1161_v39 = vld [vmem:[#allocation2 + $0xa0] sm:$0xff]  ;;  %v2043_v0 = vld [vmem:[%s6430_s5 + $0x8] sm:$0xff]  ;;  %v1451_v9 = vld [vmem:[#allocation2 + $0xb1] sm:$0xff] }
 0x128   : > { %4193 = vmatprep.mubr.msk.f32.mxu1 %vm5049_vm5, %v5050_v53  ;;  %4301 = vmatprep.mubr.msk.f32.mxu0 %vm5049_vm5, %v5050_v53  ;;  %v3645_v31 = vld [vmem:[%s6431_s6 + $0x78] sm:$0xff] }
 0x129   : > { %4851 = vmatpush3.bf16.msra.mxu1 %v4850_v40  ;;  %4882 = vmatprep.subr.bf16.mxu0 %v5048_v6  ;;  %v1306_v1 = vld [vmem:[#allocation2 + $0xe8] sm:$0xff]  ;;  %v4913_v40 = vpack.c.bf16 %v3629_v36, %v3628_v35  ;;  %v2124_v35 = vld [vmem:[%s6431_s6 + $0x38] sm:$0xff] }
 0x12a   : > { %4852 = vmatprep.subr.bf16.mxu1 %v5048_v6  ;;  %4884 = vmatpush3.bf16.msra.mxu0 %v4883_v45  ;;  %v1305_v62 = vld [vmem:[#allocation2 + $0xe0] sm:$0xff] }
 0x12b   : > { %4194 = vmatmul.mubr.msk.f32.gmra.mrb[20].mxu1 %vm707_vm4, %v5541_v51  ;;  %4302 = vmatmul.mubr.msk.f32.gmra.mrb[50].mxu0 %vm707_vm4, %v1303_v49  ;;  %v3607_v45 = vld [vmem:[%s6428_s3 + $0x1c0] sm:$0xff]  ;;  %v2048_v49 = vld [vmem:[%s6430_s5 + $0x30] sm:$0xff] }
 0x12c   : > { %4196 = vmatprep.mubr.msk.f32.mxu1 %vm5049_vm5, %v5050_v53  ;;  %4304 = vmatprep.mubr.msk.f32.mxu0 %vm5049_vm5, %v5050_v53 }
 0x12d   : > { %4854 = vmatpush3.bf16.msra.mxu1 %v4853_v50  ;;  %4885 = vmatprep.subr.bf16.mxu0 %v5048_v6  ;;  %v2045_v50 = vld [vmem:[%s6430_s5 + $0x18] sm:$0xff] }
 0x12e   : > { %4887 = vmatpush3.bf16.msra.mxu0 %v4886_v52  ;;  %4867 = vmatprep.subr.bf16.mxu1 %v5048_v6  ;;  %v1307_v7 = vld [vmem:[#allocation2 + $0xf0] sm:$0xff] }
 0x12f   : > { %4197 = vmatmul.mubr.msk.f32.gmra.mrb[22].mxu1 %vm707_vm4, %v5558_v59  ;;  %4305 = vmatmul.mubr.msk.f32.gmra.mrb[52].mxu0 %vm707_vm4, %v1304_v56  ;;  %v3609_v52 = vld [vmem:[%s6428_s3 + $0x1d0] sm:$0xff]  ;;  %v1595_v56 = vld [vmem:[#allocation2 + $0x38] sm:$0xff] }
 0x130   : > { %4199 = vmatprep.mubr.msk.f32.mxu1 %vm5049_vm5, %v5050_v53  ;;  %4307 = vmatprep.mubr.msk.f32.mxu0 %vm5049_vm5, %v5050_v53 }
 0x131   : > { %4888 = vmatprep.subr.bf16.mxu0 %v5048_v6  ;;  %2056 = vperm.xlu0 %5037, %v2043_v0   ;;  %v2125_v0 = vld [vmem:[#allocation3 + $0x8] sm:$0xff] }
 0x132   : > { %4890 = vmatpush3.bf16.msra.mxu0 %v4889_v60  ;;  %2066 = vperm.xlu1 %5038, %v2045_v50   ;;  %v4895_v60 = vpack.c.bf16 %v3610_v54, %v3609_v52  ;;  %v3660_v52 = vld [vmem:[%s6431_s6 + $0x80] sm:$0xff]  ;;  %v3661_v54 = vld [vmem:[%s6431_s6 + $0x88] sm:$0xff] }
 0x133   : > { %4200 = vmatmul.mubr.msk.f32.gmra.mrb[24].mxu1 %vm707_vm4, %v5569_v63  ;;  %4308 = vmatmul.mubr.msk.f32.gmra.mrb[54].mxu0 %vm707_vm4, %v1305_v62  ;;  %v1446_v62 = vld [vmem:[#allocation2 + $0x89] sm:$0xff] }
 0x134   : > { %4202 = vmatprep.mubr.msk.f32.mxu1 %vm5049_vm5, %v5050_v53  ;;  %4310 = vmatprep.mubr.msk.f32.mxu0 %vm5049_vm5, %v5050_v53 }
 0x135   : > { %4903 = vmatprep.subr.bf16.mxu0 %v5048_v6  ;;  %2071 = vperm.xlu0 %5037, %v2046_v42  }
 0x137   : > { %4203 = vmatmul.mubr.msk.f32.gmra.mrb[26].mxu1 %vm707_vm4, %v5585_v4  ;;  %4311 = vmatmul.mubr.msk.f32.gmra.mrb[56].mxu0 %vm707_vm4, %v1306_v1  ;;  %v3612_v1 = vld [vmem:[%s6428_s3 + $0x1e8] sm:$0xff] }
 0x138   : > { %4258 = vmatprep.mubr.msk.f32.mxu1 %vm5049_vm5, %v5050_v53  ;;  %4313 = vmatprep.mubr.msk.f32.mxu0 %vm5049_vm5, %v5050_v53 }
 0x139   : > { %2081 = vperm.xlu0 %5037, %v2048_v49  }
 0x13b   : > { %4259 = vmatmul.mubr.msk.f32.vlgmr.msra.gmra.mrb[28].mxu1 %vm707_vm4, %v1157_v11  ;;  %4314 = vmatmul.mubr.msk.f32.gmra.mrb[58].mxu0 %vm707_vm4, %v1307_v7  ;;  %v3614_v7 = vld [vmem:[%s6428_s3 + $0x1f8] sm:$0xff] }
 0x13c   : > { %4869 = vmatpush3.bf16.msra.mxu1 %v4868_v8  ;;  %4261 = vmatprep.mubr.msk.f32.mxu1 %vm5049_vm5, %v5050_v53  ;;  %v1448_v8 = vld [vmem:[#allocation2 + $0x99] sm:$0xff] }
 0x13d   : > { %4369 = vmatprep.mubr.msk.f32.mxu0 %vm5049_vm5, %v5050_v53  ;;  %4870 = vmatprep.subr.bf16.mxu1 %v5048_v6 }
 0x13f   : > { %4262 = vmatmul.mubr.msk.f32.gmra.mrb[30].mxu1 %vm707_vm4, %v1158_v15  ;;  %4370 = vmatmul.mubr.msk.f32.vlgmr.msra.gmra.mrb[60].mxu0 %vm707_vm4, %v5496_v29  ;;  %v4907_v29 = vpack.c.bf16 %v3625_v23, %v3624_v22  ;;  %v2120_v15 = vld [vmem:[%s6431_s6 + $0x18] sm:$0xff]  ;;  %v3643_v22 = vld [vmem:[%s6431_s6 + $0x68] sm:$0xff] }
 0x140   : > { %4264 = vmatprep.mubr.msk.f32.mxu1 %vm5049_vm5, %v5050_v53  ;;  %4872 = vmatpush3.bf16.msra.mxu1 %v4871_v14  ;;  %v2119_v14 = vld [vmem:[%s6431_s6 + $0x10] sm:$0xff] }
 0x141   : > { %4372 = vmatprep.mubr.msk.f32.mxu0 %vm5049_vm5, %v5050_v53  ;;  %4873 = vmatprep.subr.bf16.mxu1 %v5048_v6  ;;  %v4931_v18 = vpack.c.bf16 %v2120_v15, %v2119_v14  ;;  %v3681_v15 = vld [vmem:[%s6431_s6 + $0xf0] sm:$0xff] }
 0x142   : > { %4905 = vmatpush3.bf16.msra.mxu0 %v4904_v20  ;;  %v3642_v20 = vld [vmem:[%s6431_s6 + $0x60] sm:$0xff] }
 0x143   : > { %4265 = vmatmul.mubr.msk.f32.gmra.mrb[32].mxu1 %vm707_vm4, %v1159_v25  ;;  %4373 = vmatmul.mubr.msk.f32.gmra.mrb[62].mxu0 %vm707_vm4, %v5518_v41  ;;  %v1162_v41 = vld [vmem:[#allocation2 + $0xa8] sm:$0xff]  ;;  %v2121_v25 = vld [vmem:[%s6431_s6 + $0x20] sm:$0xff] }
 0x144   : > { %4267 = vmatprep.mubr.msk.f32.mxu1 %vm5049_vm5, %v5050_v53  ;;  %4375 = vmatprep.mubr.msk.f32.mxu0 %vm5049_vm5, %v5050_v53  ;;  %v4934_v27 = vpack.c.bf16 %v2122_v26, %v2121_v25 }
 0x145   : > { %4875 = vmatpush3.bf16.msra.mxu1 %v4874_v24  ;;  %4906 = vmatprep.subr.bf16.mxu0 %v5048_v6  ;;  %v4922_v24 = vpack.c.bf16 %v3643_v22, %v3642_v20 }
 0x146   : > { %4876 = vmatprep.subr.bf16.mxu1 %v5048_v6  ;;  %4908 = vmatpush3.bf16.msra.mxu0 %v4907_v29 }
 0x147   : > { %4268 = vmatmul.mubr.msk.f32.gmra.mrb[34].mxu1 %vm707_vm4, %v1160_v33  ;;  %4376 = vmatmul.mubr.msk.f32.gmra.mrb[64].mxu0 %vm707_vm4, %v5541_v51  ;;  %v4892_v51 = vpack.c.bf16 %v3608_v47, %v3607_v45  ;;  %v4925_v33 = vpack.c.bf16 %v3645_v31, %v3644_v30 }
 0x148   : > { %4270 = vmatprep.mubr.msk.f32.mxu1 %vm5049_vm5, %v5050_v53  ;;  %4378 = vmatprep.mubr.msk.f32.mxu0 %vm5049_vm5, %v5050_v53 }
 0x149   : > { %4878 = vmatpush3.bf16.msra.mxu1 %v4877_v32  ;;  %4909 = vmatprep.subr.bf16.mxu0 %v5048_v6 }
 0x14a   : > { %4911 = vmatpush3.bf16.msra.mxu0 %v4910_v34  ;;  %4891 = vmatprep.subr.bf16.mxu1 %v5048_v6  ;;  %v2123_v34 = vld [vmem:[%s6431_s6 + $0x30] sm:$0xff] }
 0x14b   : > { %4271 = vmatmul.mubr.msk.f32.gmra.mrb[36].mxu1 %vm707_vm4, %v1161_v39  ;;  %4379 = vmatmul.mubr.msk.f32.gmra.mrb[66].mxu0 %vm707_vm4, %v5558_v59  ;;  %v2047_v59 = vld [vmem:[%s6430_s5 + $0x28] sm:$0xff]  ;;  %v4937_v36 = vpack.c.bf16 %v2124_v35, %v2123_v34 }
 0x14c   : > { %4273 = vmatprep.mubr.msk.f32.mxu1 %vm5049_vm5, %v5050_v53  ;;  %4381 = vmatprep.mubr.msk.f32.mxu0 %vm5049_vm5, %v5050_v53 }
 0x14d   : > { %4912 = vmatprep.subr.bf16.mxu0 %v5048_v6  ;;  %2076 = vperm.xlu1 %5038, %v2047_v59   ;;  %v4940_v59 = vpack.c.bf16 %v3661_v54, %v3660_v52 }
 0x14e   : > { %4914 = vmatpush3.bf16.msra.mxu0 %v4913_v40 }
 0x14f   : > { %4274 = vmatmul.mubr.msk.f32.gmra.mrb[38].mxu1 %vm707_vm4, %v1162_v41  ;;  %4382 = vmatmul.mubr.msk.f32.gmra.mrb[68].mxu0 %vm707_vm4, %v5569_v63  ;;  %v3611_v63 = vld [vmem:[%s6428_s3 + $0x1e0] sm:$0xff] }
 0x150   : > { %4276 = vmatprep.mubr.msk.f32.mxu1 %vm5049_vm5, %v5050_v53  ;;  %4384 = vmatprep.mubr.msk.f32.mxu0 %vm5049_vm5, %v5050_v53  ;;  %v4898_v2 = vpack.c.bf16 %v3612_v1, %v3611_v63  ;;  %v2110_v41 = vld [vmem:[#allocation3 + $0x7] sm:$0xff] }
 0x151   : > { %4927 = vmatprep.subr.bf16.mxu0 %v5048_v6  ;;  %v3675_v63 = vld [vmem:[%s6431_s6 + $0xc0] sm:$0xff]  ;;  %v3676_v1 = vld [vmem:[%s6431_s6 + $0xc8] sm:$0xff] }
 0x153   : > { %4277 = vmatmul.mubr.msk.f32.gmra.mrb[40].mxu1 %vm707_vm4, %v1163_v48  ;;  %4385 = vmatmul.mubr.msk.f32.gmra.mrb[70].mxu0 %vm707_vm4, %v5585_v4  ;;  %v3613_v4 = vld [vmem:[%s6428_s3 + $0x1f0] sm:$0xff] }
 0x154   : > { %4332 = vmatprep.mubr.msk.f32.mxu1 %vm5049_vm5, %v5050_v53  ;;  %4387 = vmatprep.mubr.msk.f32.mxu0 %vm5049_vm5, %v5050_v53 }
 0x157   : > { %4333 = vmatmul.mubr.msk.f32.vlgmr.msra.gmra.mrb[42].mxu1 %vm707_vm4, %v1445_v55  ;;  %4388 = vmatmul.mubr.msk.f32.gmra.mrb[72].mxu0 %vm707_vm4, %v1595_v56 }
 0x158   : > { %4893 = vmatpush3.bf16.msra.mxu1 %v4892_v51  ;;  %4335 = vmatprep.mubr.msk.f32.mxu1 %vm5049_vm5, %v5050_v53 }
 0x159   : > { %4443 = vmatprep.mubr.msk.f32.mxu0 %vm5049_vm5, %v5050_v53  ;;  %4894 = vmatprep.subr.bf16.mxu1 %v5048_v6 }
 0x15b   : > { %4336 = vmatmul.mubr.msk.f32.gmra.mrb[44].mxu1 %vm707_vm4, %v1446_v62  ;;  %4444 = vmatmul.mubr.msk.f32.vlgmr.msra.gmra.mrb[74].mxu0 %vm707_vm4, %v5314_v38  ;;  %v4901_v38 = vpack.c.bf16 %v3614_v7, %v3613_v4  ;;  %v3662_v7 = vld [vmem:[%s6431_s6 + $0x90] sm:$0xff] }
 0x15c   : > { %4338 = vmatprep.mubr.msk.f32.mxu1 %vm5049_vm5, %v5050_v53  ;;  %4896 = vmatpush3.bf16.msra.mxu1 %v4895_v60 }
 0x15d   : > { %4446 = vmatprep.mubr.msk.f32.mxu0 %vm5049_vm5, %v5050_v53  ;;  %4897 = vmatprep.subr.bf16.mxu1 %v5048_v6 }
 0x15f   : > { %4339 = vmatmul.mubr.msk.f32.gmra.mrb[46].mxu1 %vm707_vm4, %v1447_v3  ;;  %4447 = vmatmul.mubr.msk.f32.gmra.mrb[76].mxu0 %vm707_vm4, %v5330_v46  ;;  %v1449_v46 = vld [vmem:[#allocation2 + $0xa1] sm:$0xff] }
 0x160   : > { %4341 = vmatprep.mubr.msk.f32.mxu1 %vm5049_vm5, %v5050_v53  ;;  %4449 = vmatprep.mubr.msk.f32.mxu0 %vm5049_vm5, %v5050_v53 }
 0x161   : > { %4899 = vmatpush3.bf16.msra.mxu1 %v4898_v2  ;;  %v4952_v2 = vpack.c.bf16 %v3676_v1, %v3675_v63 }
 0x162   : > { %4900 = vmatprep.subr.bf16.mxu1 %v5048_v6 }
 0x163   : > { %4342 = vmatmul.mubr.msk.f32.gmra.mrb[48].mxu1 %vm707_vm4, %v1448_v8  ;;  %4450 = vmatmul.mubr.msk.f32.gmra.mrb[78].mxu0 %vm707_vm4, %v5347_v57  ;;  %v1450_v57 = vld [vmem:[#allocation2 + $0xa9] sm:$0xff] }
 0x164   : > { %4344 = vmatprep.mubr.msk.f32.mxu1 %vm5049_vm5, %v5050_v53  ;;  %4452 = vmatprep.mubr.msk.f32.mxu0 %vm5049_vm5, %v5050_v53  ;;  %v3677_v8 = vld [vmem:[%s6431_s6 + $0xd0] sm:$0xff] }
 0x165   : > { %4902 = vmatpush3.bf16.msra.mxu1 %v4901_v38  ;;  %v3663_v38 = vld [vmem:[%s6431_s6 + $0x98] sm:$0xff] }
 0x166   : > { %4915 = vmatprep.subr.bf16.mxu1 %v5048_v6 }
 0x167   : > { %4345 = vmatmul.mubr.msk.f32.gmra.mrb[50].mxu1 %vm707_vm4, %v1449_v46  ;;  %4453 = vmatmul.mubr.msk.f32.gmra.mrb[80].mxu0 %vm707_vm4, %v5363_v5  ;;  %v1883_v5 = vld [vmem:[#allocation2 + $0x39] sm:$0xff]  ;;  %v4943_v46 = vpack.c.bf16 %v3663_v38, %v3662_v7 }
 0x168   : > { %4347 = vmatprep.mubr.msk.f32.mxu1 %vm5049_vm5, %v5050_v53  ;;  %4455 = vmatprep.mubr.msk.f32.mxu0 %vm5049_vm5, %v5050_v53 }
 0x16b   : > { %4348 = vmatmul.mubr.msk.f32.gmra.mrb[52].mxu1 %vm707_vm4, %v1450_v57  ;;  %4456 = vmatmul.mubr.msk.f32.gmra.mrb[82].mxu0 %vm707_vm4, %v5385_v17  ;;  %v3638_v17 = vld [vmem:[%s6431_s6 + $0x40] sm:$0xff]  ;;  %v3678_v57 = vld [vmem:[%s6431_s6 + $0xd8] sm:$0xff] }
 0x16c   : > { %4350 = vmatprep.mubr.msk.f32.mxu1 %vm5049_vm5, %v5050_v53  ;;  %4458 = vmatprep.mubr.msk.f32.mxu0 %vm5049_vm5, %v5050_v53 }
 0x16f   : > { %4351 = vmatmul.mubr.msk.f32.gmra.mrb[54].mxu1 %vm707_vm4, %v1451_v9  ;;  %4459 = vmatmul.mubr.msk.f32.gmra.mrb[84].mxu0 %vm707_vm4, %v5408_v28  ;;  %v4955_v9 = vpack.c.bf16 %v3678_v57, %v3677_v8 }
 0x170   : > { %4406 = vmatprep.mubr.msk.f32.mxu1 %vm5049_vm5, %v5050_v53  ;;  %4461 = vmatprep.mubr.msk.f32.mxu0 %vm5049_vm5, %v5050_v53 }
 0x173   : > { %4407 = vmatmul.mubr.msk.f32.vlgmr.msra.gmra.mrb[56].mxu1 %vm707_vm4, %v5383_v16  ;;  %4462 = vmatmul.mubr.msk.f32.gmra.mrb[86].mxu0 %vm707_vm4, %v1883_v5  ;;  %v1739_v16 = vld [vmem:[#allocation2 + $0x78] sm:$0xff] }
 0x174   : > { %4409 = vmatprep.mubr.msk.f32.mxu1 %vm5049_vm5, %v5050_v53  ;;  %4517 = vmatprep.mubr.msk.f32.mxu0 %vm5049_vm5, %v5050_v53 }
 0x177   : > { %4410 = vmatmul.mubr.msk.f32.gmra.mrb[58].mxu1 %vm707_vm4, %v5397_v21  ;;  %v3639_v21 = vld [vmem:[%s6431_s6 + $0x48] sm:$0xff] }
 0x178   : > { %4412 = vmatprep.mubr.msk.f32.mxu1 %vm5049_vm5, %v5050_v53  ;;  %v4916_v28 = vpack.c.bf16 %v3639_v21, %v3638_v17  ;;  %v3664_v17 = vld [vmem:[%s6431_s6 + $0xa0] sm:$0xff]  ;;  %v3665_v21 = vld [vmem:[%s6431_s6 + $0xa8] sm:$0xff] }
 0x17a   : > { %4917 = vmatpush3.bf16.msra.mxu1 %v4916_v28  ;;  %v3679_v28 = vld [vmem:[%s6431_s6 + $0xe0] sm:$0xff] }
 0x17b   : > { %4413 = vmatmul.mubr.msk.f32.gmra.mrb[60].mxu1 %vm707_vm4, %v5427_v37  ;;  %4918 = vmatprep.subr.bf16.mxu1 %v5048_v6  ;;  %v3640_v37 = vld [vmem:[%s6431_s6 + $0x50] sm:$0xff] }
 0x17c   : > { %4415 = vmatprep.mubr.msk.f32.mxu1 %vm5049_vm5, %v5050_v53 }
 0x17f   : > { %4416 = vmatmul.mubr.msk.f32.gmra.mrb[62].mxu1 %vm707_vm4, %v5436_v44  ;;  %v3641_v44 = vld [vmem:[%s6431_s6 + $0x58] sm:$0xff] }
 0x180   : > { %4418 = vmatprep.mubr.msk.f32.mxu1 %vm5049_vm5, %v5050_v53 }
 0x183   : > { %4419 = vmatmul.mubr.msk.f32.gmra.mrb[64].mxu1 %vm707_vm4, %v5449_v58  ;;  %v4919_v58 = vpack.c.bf16 %v3641_v44, %v3640_v37  ;;  %v4946_v37 = vpack.c.bf16 %v3665_v21, %v3664_v17  ;;  %v3680_v44 = vld [vmem:[%s6431_s6 + $0xe8] sm:$0xff] }
 0x184   : > { %4421 = vmatprep.mubr.msk.f32.mxu1 %vm5049_vm5, %v5050_v53 }
 0x185   : > { %4920 = vmatpush3.bf16.msra.mxu1 %v4919_v58  ;;  %v3666_v58 = vld [vmem:[%s6431_s6 + $0xb0] sm:$0xff] }
 0x186   : > { %4921 = vmatprep.subr.bf16.mxu1 %v5048_v6 }
 0x187   : > { %4422 = vmatmul.mubr.msk.f32.gmra.mrb[66].mxu1 %vm707_vm4, %v5457_v61  ;;  %v2117_v61 = vld [vmem:[%s6431_s6] sm:$0xff] }
 0x188   : > { %4424 = vmatprep.mubr.msk.f32.mxu1 %vm5049_vm5, %v5050_v53  ;;  %v4928_v11 = vpack.c.bf16 %v2118_v10, %v2117_v61  ;;  %v3667_v61 = vld [vmem:[%s6431_s6 + $0xb8] sm:$0xff]  ;;  %v4958_v10 = vpack.c.bf16 %v3680_v44, %v3679_v28 }
 0x189   : > { %4923 = vmatpush3.bf16.msra.mxu1 %v4922_v24 }
 0x18a   : > { %4929 = vmatpush3.bf16.msra.mxu0 %v4928_v11  ;;  %4924 = vmatprep.subr.bf16.mxu1 %v5048_v6 }
 0x18b   : > { %4425 = vmatmul.mubr.msk.f32.gmra.mrb[68].mxu1 %vm707_vm4, %v1739_v16  ;;  %4930 = vmatprep.subr.bf16.mxu0 %v5048_v6 }
 0x18c   : > { %4480 = vmatprep.mubr.msk.f32.mxu1 %vm5049_vm5, %v5050_v53 }
 0x18d   : > { %4926 = vmatpush3.bf16.msra.mxu1 %v4925_v33 }
 0x18e   : > { %4932 = vmatpush3.bf16.msra.mxu0 %v4931_v18  ;;  %4939 = vmatprep.subr.bf16.mxu1 %v5048_v6  ;;  %v3682_v18 = vld [vmem:[%s6431_s6 + $0xf8] sm:$0xff] }
 0x18f   : > { %4933 = vmatprep.subr.bf16.mxu0 %v5048_v6  ;;  %v4961_v20 = vpack.c.bf16 %v3682_v18, %v3681_v15 }
 0x190   : > { %4481 = vmatmul.mubr.msk.f32.vlgmr.msra.gmra.mrb[70].mxu1 %vm707_vm4, %v2125_v0 }
 0x191   : > { %4483 = vmatprep.mubr.msk.f32.mxu1 %vm5049_vm5, %v5050_v53  ;;  %4941 = vmatpush3.bf16.msra.mxu1 %v4940_v59 }
 0x192   : > { %4935 = vmatpush3.bf16.msra.mxu0 %v4934_v27  ;;  %4942 = vmatprep.subr.bf16.mxu1 %v5048_v6 }
 0x193   : > { %4936 = vmatprep.subr.bf16.mxu0 %v5048_v6 }
 0x195   : > { %4944 = vmatpush3.bf16.msra.mxu1 %v4943_v46 }
 0x196   : > { %4938 = vmatpush3.bf16.msra.mxu0 %v4937_v36  ;;  %4945 = vmatprep.subr.bf16.mxu1 %v5048_v6 }
 0x197   : > { %4951 = vmatprep.subr.bf16.mxu0 %v5048_v6 }
 0x199   : > { %4518 = vmatmul.mubr.msk.f32.vlgmr.msra.gmra.mrb[88].mxu0 %vm707_vm4, %v2110_v41  ;;  %4947 = vmatpush3.bf16.msra.mxu1 %v4946_v37 }
 0x19a   : > { %4520 = vmatprep.mubr.msk.f32.mxu0 %vm5049_vm5, %v5050_v53  ;;  %4953 = vmatpush3.bf16.msra.mxu0 %v4952_v2 }
 0x19b   : > { %4954 = vmatprep.subr.bf16.mxu0 %v5048_v6  ;;  %4948 = vmatprep.subr.bf16.mxu1 %v5048_v6 }
 0x19e   : > { %4956 = vmatpush3.bf16.msra.mxu0 %v4955_v9 }
 0x19f   : > { %4957 = vmatprep.subr.bf16.mxu0 %v5048_v6 }
 0x1a2   : > { %4959 = vmatpush3.bf16.msra.mxu0 %v4958_v10 }
 0x1a3   : > { %4960 = vmatprep.subr.bf16.mxu0 %v5048_v6 }
 0x1a6   : > { %4962 = vmatpush3.bf16.msra.mxu0 %v4961_v20 }
 0x1a7   : > { %4975 = vmatprep.subr.bf16.mxu0 %v5048_v6 }
 0x1c6   : > { %v5836_v12 = vpop.f32.mrb[32].mxu0 }
 0x1c7   : > { %v4223_v13 = vpop.f32.mrb[33].mxu0 }
 0x1c8   : > { %v4949_v13 = vpack.c.bf16 %v3667_v61, %v3666_v58 }
 0x1ca   : > { %v5845_v19 = vpop.f32.mrb[34].mxu0  ;;  %4950 = vmatpush3.bf16.msra.mxu1 %v4949_v13 }
 0x1cb   : > { %v4226_v23 = vpop.f32.mrb[35].mxu0  ;;  %4963 = vmatprep.subr.bf16.mxu1 %v5048_v6 }
 0x1ce   : > { %v5860_v29 = vpop.f32.mrb[36].mxu0 }
 0x1cf   : > { %v4229_v32 = vpop.f32.mrb[37].mxu0 }
 0x1d2   : > { %v5876_v39 = vpop.f32.mrb[38].mxu0 }
 0x1d3   : > { %v4232_v40 = vpop.f32.mrb[39].mxu0 }
 0x1d6   : > { %v858_v42 = vpop.f32.mrb[0].mxu1  ;;  %v5884_v43 = vpop.f32.mrb[40].mxu0 }
 0x1d7   : > { %v4149_v45 = vpop.f32.mrb[1].mxu1  ;;  %v4235_v47 = vpop.f32.mrb[41].mxu0 }
 0x1da   : > { %v863_v48 = vpop.f32.mrb[2].mxu1  ;;  %v5888_v49 = vpop.f32.mrb[42].mxu0 }
 0x1db   : > { %v4152_v50 = vpop.f32.mrb[3].mxu1  ;;  %v4238_v51 = vpop.f32.mrb[43].mxu0 }
 0x1de   : > { %v868_v55 = vpop.f32.mrb[4].mxu1  ;;  %v5896_v56 = vpop.f32.mrb[44].mxu0 }
 0x1df   : > { %v4155_v60 = vpop.f32.mrb[5].mxu1  ;;  %v4241_v62 = vpop.f32.mrb[45].mxu0 }
 0x1e2   : > { %v873_v3 = vpop.f32.mrb[6].mxu1 }
 0x1e3   : > { %v4158_v4 = vpop.f32.mrb[7].mxu1 }
 0x1e6   : > { %v878_v5 = vpop.f32.mrb[8].mxu1 }
 0x1e7   : > { %v4161_v16 = vpop.f32.mrb[9].mxu1 }
 0x1ea   : > { %v883_v11 = vpop.f32.mrb[10].mxu1 }
 0x1eb   : > { %v4164_v14 = vpop.f32.mrb[11].mxu1 }
 0x1ee   : > { %v888_v22 = vpop.f32.mrb[12].mxu1 }
 0x1ef   : > { %v4167_v23 = vpop.f32.mrb[13].mxu1 }
 0x1f2   : > { %v979_v24 = vpop.f32.mrb[14].mxu1 }
 0x1f3   : > { %v980_v25 = vadd.f32 %v979_v24, %v858_v42  ;;  %v4186_v26 = vpop.f32.mrb[15].mxu1 }
 0x1f5   : > { %v1150_v27 = vadd.f32 %v5836_v12, %v980_v25 }
 0x1f6   : > { %v984_v30 = vpop.f32.mrb[16].mxu1  ;;  %v1404_v31 = vpop.f32.mrb[46].mxu0 }
 0x1f7   : > { %v985_v32 = vadd.f32 %v984_v30, %v863_v48  ;;  %v4189_v33 = vpop.f32.mrb[17].mxu1  ;;  %v4297_v34 = vpop.f32.mrb[47].mxu0 }
 0x1f9   : > { %v1151_v35 = vadd.f32 %v5845_v19, %v985_v32 }
 0x1fa   : > { %v989_v36 = vpop.f32.mrb[18].mxu1  ;;  %v1409_v40 = vpop.f32.mrb[48].mxu0 }
 0x1fb   : > { %v990_v0 = vadd.f32 %v989_v36, %v868_v55  ;;  %v4192_v41 = vpop.f32.mrb[19].mxu1  ;;  %v4300_v45 = vpop.f32.mrb[49].mxu0 }
 0x1fd   : > { %v1152_v47 = vadd.f32 %v5860_v29, %v990_v0 }
 0x1fe   : > { %v994_v50 = vpop.f32.mrb[20].mxu1  ;;  %v1414_v51 = vpop.f32.mrb[50].mxu0 }
 0x1ff   : > { %v995_v42 = vadd.f32 %v994_v50, %v873_v3  ;;  %v4195_v52 = vpop.f32.mrb[21].mxu1  ;;  %v4303_v54 = vpop.f32.mrb[51].mxu0 }
 0x201   : > { %v1153_v12 = vadd.f32 %v5876_v39, %v995_v42 }
 0x202   : > { %v999_v59 = vpop.f32.mrb[22].mxu1  ;;  %v1419_v48 = vpop.f32.mrb[52].mxu0 }
 0x203   : > { %v1000_v60 = vadd.f32 %v999_v59, %v878_v5  ;;  %v4198_v62 = vpop.f32.mrb[23].mxu1  ;;  %v4306_v63 = vpop.f32.mrb[53].mxu0 }
 0x205   : > { %v1154_v19 = vadd.f32 %v5884_v43, %v1000_v60 }
 0x206   : > { %v1004_v1 = vpop.f32.mrb[24].mxu1  ;;  %v1424_v55 = vpop.f32.mrb[54].mxu0 }
 0x207   : > { %v1005_v2 = vadd.f32 %v1004_v1, %v883_v11  ;;  %v4201_v4 = vpop.f32.mrb[25].mxu1  ;;  %v4309_v7 = vpop.f32.mrb[55].mxu0 }
 0x209   : > { %v1155_v29 = vadd.f32 %v5888_v49, %v1005_v2 }
 0x20a   : > { %v1009_v38 = vpop.f32.mrb[26].mxu1  ;;  %v1429_v3 = vpop.f32.mrb[56].mxu0 }
 0x20b   : > { %v1010_v8 = vadd.f32 %v1009_v38, %v888_v22  ;;  %v4204_v46 = vpop.f32.mrb[27].mxu1  ;;  %v4312_v57 = vpop.f32.mrb[57].mxu0 }
 0x20d   : > { %v1156_v39 = vadd.f32 %v5896_v56, %v1010_v8 }
 0x20e   : > { %v1260_v9 = vpop.f32.mrb[28].mxu1  ;;  %v1434_v5 = vpop.f32.mrb[58].mxu0 }
 0x20f   : > { %v1294_v16 = vadd.f32 %v1260_v9, %v1150_v27  ;;  %v4260_v17 = vpop.f32.mrb[29].mxu1  ;;  %v4315_v21 = vpop.f32.mrb[59].mxu0 }
 0x211   : > { %v1438_v43 = vadd.f32 %v1404_v31, %v1294_v16 }
 0x212   : > { %v1265_v28 = vpop.f32.mrb[30].mxu1  ;;  %v1692_v37 = vpop.f32.mrb[60].mxu0 }
 0x213   : > { %v1295_v44 = vadd.f32 %v1265_v28, %v1151_v35  ;;  %v4263_v58 = vpop.f32.mrb[31].mxu1  ;;  %v4371_v61 = vpop.f32.mrb[61].mxu0 }
 0x215   : > { %v1439_v10 = vadd.f32 %v1409_v40, %v1295_v44 }
 0x216   : > { %v1270_v49 = vpop.f32.mrb[32].mxu1  ;;  %v1697_v11 = vpop.f32.mrb[62].mxu0 }
 0x217   : > { %v1296_v13 = vadd.f32 %v1270_v49, %v1152_v47  ;;  %v4266_v14 = vpop.f32.mrb[33].mxu1  ;;  %v4374_v15 = vpop.f32.mrb[63].mxu0 }
 0x219   : > { %v1440_v18 = vadd.f32 %v1414_v51, %v1296_v13 }
 0x21a   : > { %v1275_v20 = vpop.f32.mrb[34].mxu1  ;;  %v1702_v56 = vpop.f32.mrb[64].mxu0 }
 0x21b   : > { %v1297_v22 = vadd.f32 %v1275_v20, %v1153_v12  ;;  %v4269_v23 = vpop.f32.mrb[35].mxu1  ;;  %v4377_v24 = vpop.f32.mrb[65].mxu0 }
 0x21d   : > { %v1441_v25 = vadd.f32 %v1419_v48, %v1297_v22 }
 0x21e   : > { %v1280_v26 = vpop.f32.mrb[36].mxu1  ;;  %v1707_v27 = vpop.f32.mrb[66].mxu0 }
 0x21f   : > { %v1298_v30 = vadd.f32 %v1280_v26, %v1154_v19  ;;  %v4272_v31 = vpop.f32.mrb[37].mxu1  ;;  %v4380_v32 = vpop.f32.mrb[67].mxu0 }
 0x220   : > { %v5964_v31 = vld [vmem:[%s6429_s4] ss:$0 sm:$0xff] }
 0x221   : > { %v1442_v33 = vadd.f32 %v1424_v55, %v1298_v30 }
 0x222   : > { %v1285_v34 = vpop.f32.mrb[38].mxu1  ;;  %v1712_v35 = vpop.f32.mrb[68].mxu0 }
 0x223   : > { %v1299_v36 = vadd.f32 %v1285_v34, %v1155_v29  ;;  %v4275_v40 = vpop.f32.mrb[39].mxu1  ;;  %v4383_v0 = vpop.f32.mrb[69].mxu0 }
 0x224   : > { %v2052_v40 = vpop.permute.xlu0 %2051 }
 0x225   : > { %v1443_v41 = vadd.f32 %v1429_v3, %v1299_v36 }
 0x226   : > { %v1290_v45 = vpop.f32.mrb[40].mxu1  ;;  %v1717_v47 = vpop.f32.mrb[70].mxu0 }
 0x227   : > { %v1300_v50 = vadd.f32 %v1290_v45, %v1156_v39  ;;  %v4278_v51 = vpop.f32.mrb[41].mxu1  ;;  %v4386_v42 = vpop.f32.mrb[71].mxu0 }
 0x229   : > { %v1444_v52 = vadd.f32 %v1434_v5, %v1300_v50 }
 0x22a   : > { %v1548_v54 = vpop.f32.mrb[42].mxu1  ;;  %v1722_v12 = vpop.f32.mrb[72].mxu0 }
 0x22b   : > { %v1582_v59 = vadd.f32 %v1548_v54, %v1438_v43  ;;  %v4334_v48 = vpop.f32.mrb[43].mxu1  ;;  %v4389_v60 = vpop.f32.mrb[73].mxu0 }
 0x22d   : > { %v1726_v62 = vadd.f32 %v1692_v37, %v1582_v59 }
 0x22e   : > { %v1553_v63 = vpop.f32.mrb[44].mxu1  ;;  %v1980_v19 = vpop.f32.mrb[74].mxu0 }
 0x22f   : > { %v1583_v1 = vadd.f32 %v1553_v63, %v1439_v10  ;;  %v4337_v55 = vpop.f32.mrb[45].mxu1  ;;  %v4445_v2 = vpop.f32.mrb[75].mxu0 }
 0x231   : > { %v1727_v4 = vadd.f32 %v1697_v11, %v1583_v1 }
 0x232   : > { %v1558_v7 = vpop.f32.mrb[46].mxu1  ;;  %v1985_v29 = vpop.f32.mrb[76].mxu0 }
 0x233   : > { %v1584_v38 = vadd.f32 %v1558_v7, %v1440_v18  ;;  %v4340_v3 = vpop.f32.mrb[47].mxu1  ;;  %v4448_v8 = vpop.f32.mrb[77].mxu0 }
 0x235   : > { %v1728_v46 = vadd.f32 %v1702_v56, %v1584_v38 }
 0x236   : > { %v1563_v57 = vpop.f32.mrb[48].mxu1  ;;  %v1990_v39 = vpop.f32.mrb[78].mxu0 }
 0x237   : > { %v1585_v9 = vadd.f32 %v1563_v57, %v1441_v25  ;;  %v4343_v5 = vpop.f32.mrb[49].mxu1  ;;  %v4451_v16 = vpop.f32.mrb[79].mxu0 }
 0x239   : > { %v1729_v17 = vadd.f32 %v1707_v27, %v1585_v9 }
 0x23a   : > { %v1568_v21 = vpop.f32.mrb[50].mxu1  ;;  %v1995_v43 = vpop.f32.mrb[80].mxu0 }
 0x23b   : > { %v1586_v28 = vadd.f32 %v1568_v21, %v1442_v33  ;;  %v4346_v37 = vpop.f32.mrb[51].mxu1  ;;  %v4454_v44 = vpop.f32.mrb[81].mxu0 }
 0x23d   : > { %v1730_v58 = vadd.f32 %v1712_v35, %v1586_v28 }
 0x23e   : > { %v1573_v61 = vpop.f32.mrb[52].mxu1  ;;  %v2000_v10 = vpop.f32.mrb[82].mxu0 }
 0x23f   : > { %v1587_v49 = vadd.f32 %v1573_v61, %v1443_v41  ;;  %v4349_v11 = vpop.f32.mrb[53].mxu1  ;;  %v4457_v13 = vpop.f32.mrb[83].mxu0 }
 0x241   : > { %v1731_v14 = vadd.f32 %v1717_v47, %v1587_v49 }
 0x242   : > { %v1578_v15 = vpop.f32.mrb[54].mxu1  ;;  %v5955_v18 = vpop.f32.mrb[84].mxu0 }
 0x243   : > { %v1588_v20 = vadd.f32 %v1578_v15, %v1444_v52  ;;  %v4352_v56 = vpop.f32.mrb[55].mxu1  ;;  %v4460_v22 = vpop.f32.mrb[85].mxu0 }
 0x245   : > { %v5957_v23 = vadd.f32 %v1722_v12, %v1588_v20  ;;  %v2057_v12 = vpop.permute.xlu0 %2056 }
 0x246   : > { %v1836_v24 = vpop.f32.mrb[56].mxu1  ;;  %v5959_v25 = vpop.f32.mrb[86].mxu0 }
 0x247   : > { %v1870_v26 = vadd.f32 %v1836_v24, %v1726_v62  ;;  %v4408_v27 = vpop.f32.mrb[57].mxu1  ;;  %v4463_v30 = vpop.f32.mrb[87].mxu0 }
 0x249   : > { %v2014_v32 = vadd.f32 %v1980_v19, %v1870_v26  ;;  %v2062_v19 = vpop.permute.xlu1 %2061 }
 0x24a   : > { %v1841_v33 = vpop.f32.mrb[58].mxu1 }
 0x24b   : > { %v2028_v34 = vadd.f32 %v5964_v31, %v2014_v32  ;;  %v1871_v35 = vadd.f32 %v1841_v33, %v1727_v4  ;;  %v4411_v36 = vpop.f32.mrb[59].mxu1  ;;  %v3690_v33 = vld [vmem:[%s6431_s6 + $0x100] sm:$0xff] }
 0x24d   : > { %v2035_v0 = vmax.f32 %v2028_v34, 0.0  ;;  %v2015_v41 = vadd.f32 %v1985_v29, %v1871_v35  ;;  %v3691_v34 = vld [vmem:[%s6431_s6 + $0x108] sm:$0xff] }
 0x24e   : > { %v1846_v45 = vpop.f32.mrb[60].mxu1 }
 0x24f   : > { %v2084_v47 = vmul.f32 %v2052_v40, %v2035_v0  ;;  %v2029_v50 = vadd.f32 %v5964_v31, %v2015_v41  ;;  %v1872_v51 = vadd.f32 %v1846_v45, %v1728_v46  ;;  %v4414_v42 = vpop.f32.mrb[61].mxu1  ;;  %v3705_v40 = vld [vmem:[%s6431_s6 + $0x140] sm:$0xff]  ;;  %v3706_v0 = vld [vmem:[%s6431_s6 + $0x148] sm:$0xff]  ;;  %v4964_v41 = vpack.c.bf16 %v3691_v34, %v3690_v33  ;;  %v3741_v33 = vld [vmem:[%s6431_s6 + $0x1f0] sm:$0xff] }
 0x250   : > { %v3707_v42 = vld [vmem:[%s6431_s6 + $0x150] sm:$0xff]  ;;  %v3742_v34 = vld [vmem:[%s6431_s6 + $0x1f8] sm:$0xff] }
 0x251   : > { %2103 = vst.msk [vmem:[#allocation3 + $0x10] sm:$0xff] %vm707_vm4, %v2084_v47  ;;  %v2036_v52 = vmax.f32 %v2029_v50, 0.0  ;;  %v2016_v54 = vadd.f32 %v1990_v39, %v1872_v51  ;;  %v2067_v39 = vpop.permute.xlu1 %2066  ;;  %v3692_v47 = vld [vmem:[%s6431_s6 + $0x110] sm:$0xff]  ;;  %v3693_v50 = vld [vmem:[%s6431_s6 + $0x118] sm:$0xff]  ;;  %v4976_v51 = vpack.c.bf16 %v3706_v0, %v3705_v40  ;;  %v5009_v0 = vpack.c.bf16 %v3742_v34, %v3741_v33 }
 0x252   : > { %v1851_v59 = vpop.f32.mrb[62].mxu1 }
 0x253   : > { %v2085_v48 = vmul.f32 %v2057_v12, %v2036_v52  ;;  %v2030_v60 = vadd.f32 %v5964_v31, %v2016_v54  ;;  %v1873_v62 = vadd.f32 %v1851_v59, %v1729_v17  ;;  %v4417_v63 = vpop.f32.mrb[63].mxu1  ;;  %v3708_v52 = vld [vmem:[%s6431_s6 + $0x158] sm:$0xff]  ;;  %v4967_v54 = vpack.c.bf16 %v3693_v50, %v3692_v47  ;;  %v3694_v59 = vld [vmem:[%s6431_s6 + $0x120] sm:$0xff] }
 0x254   : > { %v3710_v63 = vld [vmem:[%s6431_s6 + $0x168] sm:$0xff] }
 0x255   : > { %2104 = vst.msk [vmem:[#allocation3 + $0x18] sm:$0xff] %vm707_vm4, %v2085_v48  ;;  %v2037_v1 = vmax.f32 %v2030_v60, 0.0  ;;  %v2017_v55 = vadd.f32 %v1995_v43, %v1873_v62  ;;  %v2077_v56 = vpop.permute.xlu1 %2076  ;;  %v3695_v48 = vld [vmem:[%s6431_s6 + $0x128] sm:$0xff]  ;;  %v4979_v60 = vpack.c.bf16 %v3708_v52, %v3707_v42  ;;  %v3709_v62 = vld [vmem:[%s6431_s6 + $0x160] sm:$0xff]  ;;  %v3752_v52 = vld [vmem:[%s6431_s6 + $0x210] sm:$0xff] }
 0x256   : > { %v1856_v2 = vpop.f32.mrb[64].mxu1 }
 0x257   : > { %v2086_v4 = vmul.f32 %v2062_v19, %v2037_v1  ;;  %v2031_v7 = vadd.f32 %v5964_v31, %v2017_v55  ;;  %v1874_v29 = vadd.f32 %v1856_v2, %v1730_v58  ;;  %v4420_v38 = vpop.f32.mrb[65].mxu1  ;;  %v2072_v58 = vpop.permute.xlu0 %2071  ;;  %v4970_v19 = vpack.c.bf16 %v3695_v48, %v3694_v59  ;;  %v3696_v55 = vld [vmem:[%s6431_s6 + $0x130] sm:$0xff]  ;;  %v3697_v2 = vld [vmem:[%s6431_s6 + $0x138] sm:$0xff] }
 0x258   : > { %v5973_v3 = vld [vmem:[#allocation3 + $0x10] sm:$0xff]  ;;  %v4973_v38 = vpack.c.bf16 %v3697_v2, %v3696_v55 }
 0x259   : > { %v5975_v8 = vld [vmem:[#allocation3 + $0xf] sm:$0xff]  ;;  %2105 = vst.msk [vmem:[#allocation3 + $0x20] sm:$0xff] %vm707_vm4, %v2086_v4  ;;  %v2038_v46 = vmax.f32 %v2031_v7, 0.0  ;;  %v2018_v57 = vadd.f32 %v2000_v10, %v1874_v29  ;;  %4484 = vmatmul.mubr.msk.f32.gmra.mrb[72].mxu1 %vm707_vm4, %v5973_v3  ;;  %v4982_v4 = vpack.c.bf16 %v3710_v63, %v3709_v62  ;;  %v3712_v29 = vld [vmem:[%s6431_s6 + $0x178] sm:$0xff] }
 0x25a   : > { %4521 = vmatmul.mubr.msk.f32.gmra.mrb[90].mxu0 %vm707_vm4, %v5975_v8  ;;  %v1861_v9 = vpop.f32.mrb[66].mxu1  ;;  %4486 = vmatprep.mubr.msk.f32.mxu1 %vm5049_vm5, %v5050_v53  ;;  %v2383_v45 = vld [vmem:[#allocation3 + $0x9] sm:$0xff] }
 0x25b   : > { %4523 = vmatprep.mubr.msk.f32.mxu0 %vm5049_vm5, %v5050_v53  ;;  %v2087_v5 = vmul.f32 %v2067_v39, %v2038_v46  ;;  %v2032_v16 = vadd.f32 %v5964_v31, %v2018_v57  ;;  %v1875_v17 = vadd.f32 %v1861_v9, %v1731_v14  ;;  %v4423_v21 = vpop.f32.mrb[67].mxu1  ;;  %v2082_v27 = vpop.permute.xlu0 %2081  ;;  %v3711_v7 = vld [vmem:[%s6431_s6 + $0x170] sm:$0xff]  ;;  %v3720_v9 = vld [vmem:[%s6431_s6 + $0x180] sm:$0xff] }
 0x25c   : > { %v5987_v43 = vld [vmem:[#allocation3 + $0x18] sm:$0xff]  ;;  %v4985_v46 = vpack.c.bf16 %v3712_v29, %v3711_v7  ;;  %v3735_v21 = vld [vmem:[%s6431_s6 + $0x1c0] sm:$0xff] }
 0x25d   : > { %v5989_v28 = vld [vmem:[#allocation3 + $0x17] sm:$0xff]  ;;  %2106 = vst.msk [vmem:[#allocation3 + $0x28] sm:$0xff] %vm707_vm4, %v2087_v5  ;;  %v2039_v37 = vmax.f32 %v2032_v16, 0.0  ;;  %v2019_v44 = vadd.f32 %v5955_v18, %v1875_v17  ;;  %4487 = vmatmul.mubr.msk.f32.gmra.mrb[74].mxu1 %vm707_vm4, %v5987_v43  ;;  %v3721_v5 = vld [vmem:[%s6431_s6 + $0x188] sm:$0xff] }
 0x25e   : > { %4524 = vmatmul.mubr.msk.f32.gmra.mrb[92].mxu0 %vm707_vm4, %v5989_v28  ;;  %v1866_v61 = vpop.f32.mrb[68].mxu1  ;;  %4489 = vmatprep.mubr.msk.f32.mxu1 %vm5049_vm5, %v5050_v53  ;;  %v6088_v12 = vld [vmem:[#allocation3 + $0x11] sm:$0xff] }
 0x25f   : > { %4526 = vmatprep.mubr.msk.f32.mxu0 %vm5049_vm5, %v5050_v53  ;;  %v2088_v10 = vmul.f32 %v2072_v58, %v2039_v37  ;;  %v2033_v49 = vadd.f32 %v5964_v31, %v2019_v44  ;;  %v1876_v11 = vadd.f32 %v1866_v61, %v5957_v23  ;;  %v4426_v13 = vpop.f32.mrb[69].mxu1  ;;  %v3736_v37 = vld [vmem:[%s6431_s6 + $0x1c8] sm:$0xff]  ;;  %v4988_v44 = vpack.c.bf16 %v3721_v5, %v3720_v9  ;;  %v3722_v58 = vld [vmem:[%s6431_s6 + $0x190] sm:$0xff]  ;;  %v3723_v61 = vld [vmem:[%s6431_s6 + $0x198] sm:$0xff] }
 0x260   : > { %v6003_v14 = vld [vmem:[#allocation3 + $0x20] sm:$0xff] }
 0x261   : > { %v6005_v15 = vld [vmem:[#allocation3 + $0x1f] sm:$0xff]  ;;  %2107 = vst.msk [vmem:[#allocation3 + $0x30] sm:$0xff] %vm707_vm4, %v2088_v10  ;;  %v2040_v18 = vmax.f32 %v2033_v49, 0.0  ;;  %v2020_v20 = vadd.f32 %v5959_v25, %v1876_v11  ;;  %4490 = vmatmul.mubr.msk.f32.gmra.mrb[76].mxu1 %vm707_vm4, %v6003_v14  ;;  %v5000_v10 = vpack.c.bf16 %v3736_v37, %v3735_v21  ;;  %v3737_v49 = vld [vmem:[%s6431_s6 + $0x1d0] sm:$0xff] }
 0x262   : > { %4527 = vmatmul.mubr.msk.f32.gmra.mrb[94].mxu0 %vm707_vm4, %v6005_v15  ;;  %4492 = vmatprep.mubr.msk.f32.mxu1 %vm5049_vm5, %v5050_v53  ;;  %v6111_v1 = vld [vmem:[#allocation3 + $0x19] sm:$0xff] }
 0x263   : > { %4529 = vmatprep.mubr.msk.f32.mxu0 %vm5049_vm5, %v5050_v53  ;;  %v2089_v22 = vmul.f32 %v2077_v56, %v2040_v18  ;;  %v2034_v23 = vadd.f32 %v5964_v31, %v2020_v20  ;;  %v3738_v11 = vld [vmem:[%s6431_s6 + $0x1d8] sm:$0xff]  ;;  %v3724_v13 = vld [vmem:[%s6431_s6 + $0x1a0] sm:$0xff]  ;;  %v3725_v18 = vld [vmem:[%s6431_s6 + $0x1a8] sm:$0xff]  ;;  %v2228_v42 = vpop.f32.mrb[70].mxu1 }
 0x264   : > { %v6018_v24 = vld [vmem:[#allocation3 + $0x28] sm:$0xff]  ;;  %v5003_v20 = vpack.c.bf16 %v3738_v11, %v3737_v49  ;;  %v3739_v56 = vld [vmem:[%s6431_s6 + $0x1e0] sm:$0xff] }
 0x265   : > { %v6020_v26 = vld [vmem:[#allocation3 + $0x27] sm:$0xff]  ;;  %2108 = vst.msk [vmem:[#allocation3 + $0x38] sm:$0xff] %vm707_vm4, %v2089_v22  ;;  %v2041_v25 = vmax.f32 %v2034_v23, 0.0  ;;  %4493 = vmatmul.mubr.msk.f32.gmra.mrb[78].mxu1 %vm707_vm4, %v6018_v24  ;;  %v4994_v23 = vpack.c.bf16 %v3725_v18, %v3724_v13 }
 0x266   : > { %4530 = vmatmul.mubr.msk.f32.gmra.mrb[96].mxu0 %vm707_vm4, %v6020_v26  ;;  %4495 = vmatprep.mubr.msk.f32.mxu1 %vm5049_vm5, %v5050_v53  ;;  %v3740_v22 = vld [vmem:[%s6431_s6 + $0x1e8] sm:$0xff] }
 0x267   : > { %4532 = vmatprep.mubr.msk.f32.mxu0 %vm5049_vm5, %v5050_v53  ;;  %v2090_v30 = vmul.f32 %v2082_v27, %v2041_v25  ;;  %v3726_v25 = vld [vmem:[%s6431_s6 + $0x1b0] sm:$0xff]  ;;  %v3727_v27 = vld [vmem:[%s6431_s6 + $0x1b8] sm:$0xff] }
 0x268   : > { %v6031_v31 = vld [vmem:[#allocation3 + $0x30] sm:$0xff]  ;;  %v4997_v40 = vpack.c.bf16 %v3727_v27, %v3726_v25 }
 0x269   : > { %v6033_v32 = vld [vmem:[#allocation3 + $0x2f] sm:$0xff]  ;;  %2109 = vst.msk [vmem:[#allocation3 + $0x40] sm:$0xff] %vm707_vm4, %v2090_v30  ;;  %4496 = vmatmul.mubr.msk.f32.gmra.mrb[80].mxu1 %vm707_vm4, %v6031_v31  ;;  %v5006_v30 = vpack.c.bf16 %v3740_v22, %v3739_v56 }
 0x26a   : > { %4533 = vmatmul.mubr.msk.f32.gmra.mrb[98].mxu0 %vm707_vm4, %v6033_v32  ;;  %4498 = vmatprep.mubr.msk.f32.mxu1 %vm5049_vm5, %v5050_v53  ;;  %v6147_v57 = vld [vmem:[#allocation3 + $0x29] sm:$0xff] }
 0x26b   : > { %4535 = vmatprep.mubr.msk.f32.mxu0 %vm5049_vm5, %v5050_v53 }
 0x26c   : > { %v6050_v35 = vld [vmem:[#allocation3 + $0x38] sm:$0xff]  ;;  %v2349_v59 = vpop.f32.mrb[88].mxu0 }
 0x26d   : > { %v6052_v36 = vld [vmem:[#allocation3 + $0x37] sm:$0xff]  ;;  %4499 = vmatmul.mubr.msk.f32.gmra.mrb[82].mxu1 %vm707_vm4, %v6050_v35  ;;  %v6309_v48 = vadd.f32 %v2349_v59, %v2228_v42 }
 0x26e   : > { %4536 = vmatmul.mubr.msk.f32.gmra.mrb[100].mxu0 %vm707_vm4, %v6052_v36  ;;  %4554 = vmatprep.mubr.msk.f32.mxu1 %vm5049_vm5, %v5050_v53  ;;  %v6159_v39 = vld [vmem:[#allocation3 + $0x31] sm:$0xff] }
 0x26f   : > { %4591 = vmatprep.mubr.msk.f32.mxu0 %vm5049_vm5, %v5050_v53 }
 0x270   : > { %v6175_v16 = vld [vmem:[#allocation3 + $0x39] sm:$0xff]  ;;  %v6290_v50 = vld [vmem:[#allocation3 + $0x41] sm:$0xff] }
 0x271   : > { %4555 = vmatmul.mubr.msk.f32.vlgmr.msra.gmra.mrb[84].mxu1 %vm707_vm4, %v2383_v45  ;;  %v6177_v17 = vld [vmem:[#allocation3 + $0x3f] sm:$0xff]  ;;  %v3751_v45 = vld [vmem:[%s6431_s6 + $0x208] sm:$0xff] }
 0x272   : > { %4592 = vmatmul.mubr.msk.f32.vlgmr.msra.gmra.mrb[102].mxu0 %vm707_vm4, %v5975_v8  ;;  %4965 = vmatpush3.bf16.msra.mxu1 %v4964_v41  ;;  %v6135_v8 = vld [vmem:[#allocation3 + $0x21] sm:$0xff] }
 0x273   : > { %4557 = vmatprep.mubr.msk.f32.mxu1 %vm5049_vm5, %v5050_v53  ;;  %4594 = vmatprep.mubr.msk.f32.mxu0 %vm5049_vm5, %v5050_v53  ;;  %v3750_v41 = vld [vmem:[%s6431_s6 + $0x200] sm:$0xff] }
 0x274   : > { %4966 = vmatprep.subr.bf16.mxu1 %v5048_v6  ;;  %4977 = vmatpush3.bf16.msra.mxu0 %v4976_v51  ;;  %v2677_v47 = vld [vmem:[#allocation3 + $0x40] sm:$0xff]  ;;  %v5012_v51 = vpack.c.bf16 %v3751_v45, %v3750_v41 }
 0x275   : > { %4558 = vmatmul.mubr.msk.f32.gmra.mrb[86].mxu1 %vm707_vm4, %v6088_v12  ;;  %4978 = vmatprep.subr.bf16.mxu0 %v5048_v6 }
 0x276   : > { %4595 = vmatmul.mubr.msk.f32.gmra.mrb[104].mxu0 %vm707_vm4, %v5989_v28  ;;  %4560 = vmatprep.mubr.msk.f32.mxu1 %vm5049_vm5, %v5050_v53 }
 0x277   : > { %4597 = vmatprep.mubr.msk.f32.mxu0 %vm5049_vm5, %v5050_v53  ;;  %4968 = vmatpush3.bf16.msra.mxu1 %v4967_v54  ;;  %v3753_v54 = vld [vmem:[%s6431_s6 + $0x218] sm:$0xff] }
 0x278   : > { %4969 = vmatprep.subr.bf16.mxu1 %v5048_v6  ;;  %4980 = vmatpush3.bf16.msra.mxu0 %v4979_v60  ;;  %v4519_v60 = vpop.f32.mrb[89].mxu0  ;;  %v5015_v62 = vpack.c.bf16 %v3753_v54, %v3752_v52 }
 0x279   : > { %4561 = vmatmul.mubr.msk.f32.gmra.mrb[88].mxu1 %vm707_vm4, %v6111_v1  ;;  %4981 = vmatprep.subr.bf16.mxu0 %v5048_v6 }
 0x27a   : > { %4598 = vmatmul.mubr.msk.f32.gmra.mrb[106].mxu0 %vm707_vm4, %v6005_v15  ;;  %4563 = vmatprep.mubr.msk.f32.mxu1 %vm5049_vm5, %v5050_v53 }
 0x27b   : > { %4600 = vmatprep.mubr.msk.f32.mxu0 %vm5049_vm5, %v5050_v53  ;;  %4971 = vmatpush3.bf16.msra.mxu1 %v4970_v19  ;;  %v3756_v19 = vld [vmem:[%s6431_s6 + $0x230] sm:$0xff] }
 0x27c   : > { %4972 = vmatprep.subr.bf16.mxu1 %v5048_v6  ;;  %4983 = vmatpush3.bf16.msra.mxu0 %v4982_v4 }
 0x27d   : > { %4564 = vmatmul.mubr.msk.f32.gmra.mrb[90].mxu1 %vm707_vm4, %v6135_v8  ;;  %4984 = vmatprep.subr.bf16.mxu0 %v5048_v6 }
 0x27e   : > { %4601 = vmatmul.mubr.msk.f32.gmra.mrb[108].mxu0 %vm707_vm4, %v6020_v26  ;;  %4566 = vmatprep.mubr.msk.f32.mxu1 %vm5049_vm5, %v5050_v53 }
 0x27f   : > { %4603 = vmatprep.mubr.msk.f32.mxu0 %vm5049_vm5, %v5050_v53  ;;  %4974 = vmatpush3.bf16.msra.mxu1 %v4973_v38 }
 0x280   : > { %4986 = vmatpush3.bf16.msra.mxu0 %v4985_v46  ;;  %4987 = vmatprep.subr.bf16.mxu1 %v5048_v6 }
 0x281   : > { %4567 = vmatmul.mubr.msk.f32.gmra.mrb[92].mxu1 %vm707_vm4, %v6147_v57  ;;  %4999 = vmatprep.subr.bf16.mxu0 %v5048_v6 }
 0x282   : > { %4604 = vmatmul.mubr.msk.f32.gmra.mrb[110].mxu0 %vm707_vm4, %v6033_v32  ;;  %4569 = vmatprep.mubr.msk.f32.mxu1 %vm5049_vm5, %v5050_v53 }
 0x283   : > { %4606 = vmatprep.mubr.msk.f32.mxu0 %vm5049_vm5, %v5050_v53 }
 0x285   : > { %4570 = vmatmul.mubr.msk.f32.gmra.mrb[94].mxu1 %vm707_vm4, %v6159_v39 }
 0x286   : > { %4607 = vmatmul.mubr.msk.f32.gmra.mrb[112].mxu0 %vm707_vm4, %v6052_v36  ;;  %4572 = vmatprep.mubr.msk.f32.mxu1 %vm5049_vm5, %v5050_v53 }
 0x287   : > { %4609 = vmatprep.mubr.msk.f32.mxu0 %vm5049_vm5, %v5050_v53 }
 0x289   : > { %4573 = vmatmul.mubr.msk.f32.gmra.mrb[96].mxu1 %vm707_vm4, %v6175_v16 }
 0x28a   : > { %4610 = vmatmul.mubr.msk.f32.gmra.mrb[114].mxu0 %vm707_vm4, %v6177_v17  ;;  %4628 = vmatprep.mubr.msk.f32.mxu1 %vm5049_vm5, %v5050_v53 }
 0x28b   : > { %4665 = vmatprep.mubr.msk.f32.mxu0 %vm5049_vm5, %v5050_v53 }
 0x28d   : > { %4629 = vmatmul.mubr.msk.f32.vlgmr.msra.gmra.mrb[98].mxu1 %vm707_vm4, %v5973_v3  ;;  %v4991_v3 = vpack.c.bf16 %v3723_v61, %v3722_v58 }
 0x28e   : > { %4666 = vmatmul.mubr.msk.f32.vlgmr.msra.gmra.mrb[116].mxu0 %vm707_vm4, %v6088_v12  ;;  %4989 = vmatpush3.bf16.msra.mxu1 %v4988_v44  ;;  %v4482_v12 = vpop.f32.mrb[71].mxu1 }
 0x28f   : > { %4631 = vmatprep.mubr.msk.f32.mxu1 %vm5049_vm5, %v5050_v53  ;;  %4668 = vmatprep.mubr.msk.f32.mxu0 %vm5049_vm5, %v5050_v53 }
 0x290   : > { %4990 = vmatprep.subr.bf16.mxu1 %v5048_v6  ;;  %5001 = vmatpush3.bf16.msra.mxu0 %v5000_v10 }
 0x291   : > { %4632 = vmatmul.mubr.msk.f32.gmra.mrb[100].mxu1 %vm707_vm4, %v5987_v43  ;;  %5002 = vmatprep.subr.bf16.mxu0 %v5048_v6 }
 0x292   : > { %4669 = vmatmul.mubr.msk.f32.gmra.mrb[118].mxu0 %vm707_vm4, %v6111_v1  ;;  %4634 = vmatprep.mubr.msk.f32.mxu1 %vm5049_vm5, %v5050_v53 }
 0x293   : > { %4671 = vmatprep.mubr.msk.f32.mxu0 %vm5049_vm5, %v5050_v53  ;;  %4992 = vmatpush3.bf16.msra.mxu1 %v4991_v3 }
 0x294   : > { %4993 = vmatprep.subr.bf16.mxu1 %v5048_v6  ;;  %5004 = vmatpush3.bf16.msra.mxu0 %v5003_v20 }
 0x295   : > { %4635 = vmatmul.mubr.msk.f32.gmra.mrb[102].mxu1 %vm707_vm4, %v6003_v14  ;;  %5005 = vmatprep.subr.bf16.mxu0 %v5048_v6 }
 0x296   : > { %4672 = vmatmul.mubr.msk.f32.gmra.mrb[120].mxu0 %vm707_vm4, %v6135_v8  ;;  %4637 = vmatprep.mubr.msk.f32.mxu1 %vm5049_vm5, %v5050_v53 }
 0x297   : > { %4674 = vmatprep.mubr.msk.f32.mxu0 %vm5049_vm5, %v5050_v53  ;;  %4995 = vmatpush3.bf16.msra.mxu1 %v4994_v23 }
 0x298   : > { %4996 = vmatprep.subr.bf16.mxu1 %v5048_v6  ;;  %5007 = vmatpush3.bf16.msra.mxu0 %v5006_v30 }
 0x299   : > { %4638 = vmatmul.mubr.msk.f32.gmra.mrb[104].mxu1 %vm707_vm4, %v6018_v24  ;;  %5008 = vmatprep.subr.bf16.mxu0 %v5048_v6 }
 0x29a   : > { %4675 = vmatmul.mubr.msk.f32.gmra.mrb[122].mxu0 %vm707_vm4, %v6147_v57  ;;  %4640 = vmatprep.mubr.msk.f32.mxu1 %vm5049_vm5, %v5050_v53 }
 0x29b   : > { %4677 = vmatprep.mubr.msk.f32.mxu0 %vm5049_vm5, %v5050_v53  ;;  %4998 = vmatpush3.bf16.msra.mxu1 %v4997_v40 }
 0x29c   : > { %5010 = vmatpush3.bf16.msra.mxu0 %v5009_v0  ;;  %5011 = vmatprep.subr.bf16.mxu1 %v5048_v6 }
 0x29d   : > { %4641 = vmatmul.mubr.msk.f32.gmra.mrb[106].mxu1 %vm707_vm4, %v6031_v31 }
 0x29e   : > { %4678 = vmatmul.mubr.msk.f32.gmra.mrb[124].mxu0 %vm707_vm4, %v6159_v39  ;;  %4643 = vmatprep.mubr.msk.f32.mxu1 %vm5049_vm5, %v5050_v53 }
 0x29f   : > { %4680 = vmatprep.mubr.msk.f32.mxu0 %vm5049_vm5, %v5050_v53 }
 0x2a1   : > { %4644 = vmatmul.mubr.msk.f32.gmra.mrb[108].mxu1 %vm707_vm4, %v6050_v35 }
 0x2a2   : > { %4681 = vmatmul.mubr.msk.f32.gmra.mrb[126].mxu0 %vm707_vm4, %v6175_v16  ;;  %4646 = vmatprep.mubr.msk.f32.mxu1 %vm5049_vm5, %v5050_v53 }
 0x2a3   : > { %4683 = vmatprep.mubr.msk.f32.mxu0 %vm5049_vm5, %v5050_v53 }
 0x2a5   : > { %4647 = vmatmul.mubr.msk.f32.gmra.mrb[110].mxu1 %vm707_vm4, %v2677_v47 }
 0x2a6   : > { %4684 = vmatmul.mubr.msk.f32.gmra.mrb[128].mxu0 %vm707_vm4, %v6290_v50  ;;  %4702 = vmatprep.mubr.msk.f32.mxu1 %vm5049_vm5, %v5050_v53 }
 0x2a7   : > { %4739 = vmatprep.mubr.msk.f32.mxu0 %vm5049_vm5, %v5050_v53 }
 0x2a9   : > { %4703 = vmatmul.mubr.msk.f32.vlgmr.msra.gmra.mrb[112].mxu1 %vm707_vm4, %v5989_v28  ;;  %v3754_v28 = vld [vmem:[%s6431_s6 + $0x220] sm:$0xff] }
 0x2aa   : > { %4740 = vmatmul.mubr.msk.f32.vlgmr.msra.gmra.mrb[130].mxu0 %vm707_vm4, %v5987_v43  ;;  %5013 = vmatpush3.bf16.msra.mxu1 %v5012_v51  ;;  %v3755_v43 = vld [vmem:[%s6431_s6 + $0x228] sm:$0xff] }
 0x2ab   : > { %4705 = vmatprep.mubr.msk.f32.mxu1 %vm5049_vm5, %v5050_v53  ;;  %4742 = vmatprep.mubr.msk.f32.mxu0 %vm5049_vm5, %v5050_v53  ;;  %v5018_v63 = vpack.c.bf16 %v3755_v43, %v3754_v28 }
 0x2ac   : > { %5014 = vmatprep.subr.bf16.mxu1 %v5048_v6 }
 0x2ad   : > { %4706 = vmatmul.mubr.msk.f32.gmra.mrb[114].mxu1 %vm707_vm4, %v6005_v15  ;;  %v3757_v15 = vld [vmem:[%s6431_s6 + $0x238] sm:$0xff] }
 0x2ae   : > { %4743 = vmatmul.mubr.msk.f32.gmra.mrb[132].mxu0 %vm707_vm4, %v6003_v14  ;;  %4708 = vmatprep.mubr.msk.f32.mxu1 %vm5049_vm5, %v5050_v53  ;;  %v5021_v14 = vpack.c.bf16 %v3757_v15, %v3756_v19 }
 0x2af   : > { %4745 = vmatprep.mubr.msk.f32.mxu0 %vm5049_vm5, %v5050_v53  ;;  %5016 = vmatpush3.bf16.msra.mxu1 %v5015_v62 }
 0x2b0   : > { %5017 = vmatprep.subr.bf16.mxu1 %v5048_v6 }
 0x2b1   : > { %4709 = vmatmul.mubr.msk.f32.gmra.mrb[116].mxu1 %vm707_vm4, %v6020_v26  ;;  %v3253_v26 = vld [vmem:[#allocation3 + $0x49] sm:$0xff] }
 0x2b2   : > { %4746 = vmatmul.mubr.msk.f32.gmra.mrb[134].mxu0 %vm707_vm4, %v6018_v24  ;;  %4711 = vmatprep.mubr.msk.f32.mxu1 %vm5049_vm5, %v5050_v53  ;;  %v2965_v24 = vld [vmem:[#allocation3 + $0x47] sm:$0xff] }
 0x2b3   : > { %4748 = vmatprep.mubr.msk.f32.mxu0 %vm5049_vm5, %v5050_v53  ;;  %5019 = vmatpush3.bf16.msra.mxu1 %v5018_v63 }
 0x2b4   : > { %5020 = vmatprep.subr.bf16.mxu1 %v5048_v6  ;;  %v3109_v6 = vld [vmem:[#allocation3 + $0x48] sm:$0xff] }
 0x2b5   : > { %4712 = vmatmul.mubr.msk.f32.gmra.mrb[118].mxu1 %vm707_vm4, %v6033_v32 }
 0x2b6   : > { %4749 = vmatmul.mubr.msk.f32.gmra.mrb[136].mxu0 %vm707_vm4, %v6031_v31  ;;  %4714 = vmatprep.mubr.msk.f32.mxu1 %vm5049_vm5, %v5050_v53 }
 0x2b7   : > { %4751 = vmatprep.mubr.msk.f32.mxu0 %vm5049_vm5, %v5050_v53  ;;  %5022 = vmatpush3.bf16.msra.mxu1 %v5021_v14 }
 0x2b9   : > { %4715 = vmatmul.mubr.msk.f32.gmra.mrb[120].mxu1 %vm707_vm4, %v6052_v36 }
 0x2ba   : > { %4752 = vmatmul.mubr.msk.f32.gmra.mrb[138].mxu0 %vm707_vm4, %v6050_v35  ;;  %4717 = vmatprep.mubr.msk.f32.mxu1 %vm5049_vm5, %v5050_v53 }
 0x2bb   : > { %4754 = vmatprep.mubr.msk.f32.mxu0 %vm5049_vm5, %v5050_v53 }
 0x2bd   : > { %4718 = vmatmul.mubr.msk.f32.gmra.mrb[122].mxu1 %vm707_vm4, %v6177_v17 }
 0x2be   : > { %4755 = vmatmul.mubr.msk.f32.gmra.mrb[140].mxu0 %vm707_vm4, %v2677_v47  ;;  %4720 = vmatprep.mubr.msk.f32.mxu1 %vm5049_vm5, %v5050_v53 }
 0x2bf   : > { %4757 = vmatprep.mubr.msk.f32.mxu0 %vm5049_vm5, %v5050_v53 }
 0x2c1   : > { %4721 = vmatmul.mubr.msk.f32.gmra.mrb[124].mxu1 %vm707_vm4, %v2965_v24 }
 0x2c2   : > { %4758 = vmatmul.mubr.msk.f32.gmra.mrb[142].mxu0 %vm707_vm4, %v3109_v6  ;;  %4776 = vmatprep.mubr.msk.f32.mxu1 %vm5049_vm5, %v5050_v53 }
 0x2c5   : > { %4777 = vmatmul.mubr.msk.f32.vlgmr.msra.gmra.mrb[126].mxu1 %vm707_vm4, %v6111_v1 }
 0x2c6   : > { %4779 = vmatprep.mubr.msk.f32.mxu1 %vm5049_vm5, %v5050_v53 }
 0x2c9   : > { %4780 = vmatmul.mubr.msk.f32.gmra.mrb[128].mxu1 %vm707_vm4, %v6135_v8 }
 0x2ca   : > { %4782 = vmatprep.mubr.msk.f32.mxu1 %vm5049_vm5, %v5050_v53 }
 0x2cd   : > { %4783 = vmatmul.mubr.msk.f32.gmra.mrb[130].mxu1 %vm707_vm4, %v6147_v57 }
 0x2ce   : > { %4785 = vmatprep.mubr.msk.f32.mxu1 %vm5049_vm5, %v5050_v53 }
 0x2d1   : > { %4786 = vmatmul.mubr.msk.f32.gmra.mrb[132].mxu1 %vm707_vm4, %v6159_v39 }
 0x2d2   : > { %4788 = vmatprep.mubr.msk.f32.mxu1 %vm5049_vm5, %v5050_v53 }
 0x2d5   : > { %4789 = vmatmul.mubr.msk.f32.gmra.mrb[134].mxu1 %vm707_vm4, %v6175_v16 }
 0x2d6   : > { %4791 = vmatprep.mubr.msk.f32.mxu1 %vm5049_vm5, %v5050_v53 }
 0x2d9   : > { %4792 = vmatmul.mubr.msk.f32.gmra.mrb[136].mxu1 %vm707_vm4, %v6290_v50 }
 0x2da   : > { %4794 = vmatprep.mubr.msk.f32.mxu1 %vm5049_vm5, %v5050_v53 }
 0x2dd   : > { %4795 = vmatmul.mubr.msk.f32.gmra.mrb[138].mxu1 %vm707_vm4, %v3253_v26 }
 0x32c   : > { %v2233_v31 = vpop.f32.mrb[72].mxu1 }
 0x32d   : > { %v2354_v32 = vpop.f32.mrb[90].mxu0  ;;  %v4485_v36 = vpop.f32.mrb[73].mxu1 }
 0x32e   : > { %v2355_v35 = vadd.f32 %v2354_v32, %v2233_v31  ;;  %v4522_v1 = vpop.f32.mrb[91].mxu0 }
 0x330   : > { %v2238_v55 = vpop.f32.mrb[74].mxu1 }
 0x331   : > { %v2359_v2 = vpop.f32.mrb[92].mxu0  ;;  %v4488_v7 = vpop.f32.mrb[75].mxu1 }
 0x332   : > { %v2360_v4 = vadd.f32 %v2359_v2, %v2238_v55  ;;  %v4525_v29 = vpop.f32.mrb[93].mxu0 }
 0x334   : > { %v2243_v38 = vpop.f32.mrb[76].mxu1 }
 0x335   : > { %v2364_v8 = vpop.f32.mrb[94].mxu0  ;;  %v4491_v57 = vpop.f32.mrb[77].mxu1 }
 0x336   : > { %v2365_v46 = vadd.f32 %v2364_v8, %v2243_v38  ;;  %v4528_v39 = vpop.f32.mrb[95].mxu0 }
 0x338   : > { %v2248_v9 = vpop.f32.mrb[78].mxu1 }
 0x339   : > { %v2369_v53 = vpop.f32.mrb[96].mxu0  ;;  %v4494_v16 = vpop.f32.mrb[79].mxu1 }
 0x33a   : > { %v2370_v5 = vadd.f32 %v2369_v53, %v2248_v9  ;;  %v4531_v17 = vpop.f32.mrb[97].mxu0 }
 0x33c   : > { %v2253_v21 = vpop.f32.mrb[80].mxu1 }
 0x33d   : > { %v2374_v37 = vpop.f32.mrb[98].mxu0  ;;  %v4497_v58 = vpop.f32.mrb[81].mxu1 }
 0x33e   : > { %v2375_v44 = vadd.f32 %v2374_v37, %v2253_v21  ;;  %v4534_v61 = vpop.f32.mrb[99].mxu0 }
 0x340   : > { %v2258_v10 = vpop.f32.mrb[82].mxu1 }
 0x341   : > { %v2379_v49 = vpop.f32.mrb[100].mxu0  ;;  %v4500_v3 = vpop.f32.mrb[83].mxu1 }
 0x342   : > { %v2380_v11 = vadd.f32 %v2379_v49, %v2258_v10  ;;  %v4537_v13 = vpop.f32.mrb[101].mxu0 }
 0x344   : > { %v2486_v18 = vpop.f32.mrb[84].mxu1 }
 0x345   : > { %v2630_v20 = vpop.f32.mrb[102].mxu0  ;;  %v2520_v56 = vadd.f32 %v2486_v18, %v6309_v48  ;;  %v4556_v22 = vpop.f32.mrb[85].mxu1 }
 0x346   : > { %v4593_v23 = vpop.f32.mrb[103].mxu0 }
 0x347   : > { %v2664_v25 = vadd.f32 %v2630_v20, %v2520_v56 }
 0x348   : > { %v2491_v27 = vpop.f32.mrb[86].mxu1 }
 0x349   : > { %v2635_v30 = vpop.f32.mrb[104].mxu0  ;;  %v2521_v33 = vadd.f32 %v2491_v27, %v2355_v35  ;;  %v4559_v34 = vpop.f32.mrb[87].mxu1 }
 0x34a   : > { %v4596_v40 = vpop.f32.mrb[105].mxu0 }
 0x34b   : > { %v2665_v0 = vadd.f32 %v2635_v30, %v2521_v33 }
 0x34c   : > { %v2496_v41 = vpop.f32.mrb[88].mxu1 }
 0x34d   : > { %v2640_v45 = vpop.f32.mrb[106].mxu0  ;;  %v2522_v47 = vadd.f32 %v2496_v41, %v2360_v4  ;;  %v4562_v50 = vpop.f32.mrb[89].mxu1 }
 0x34e   : > { %v4599_v51 = vpop.f32.mrb[107].mxu0 }
 0x34f   : > { %v2666_v42 = vadd.f32 %v2640_v45, %v2522_v47 }
 0x350   : > { %v2501_v52 = vpop.f32.mrb[90].mxu1 }
 0x351   : > { %v2645_v54 = vpop.f32.mrb[108].mxu0  ;;  %v2523_v12 = vadd.f32 %v2501_v52, %v2365_v46  ;;  %v4565_v59 = vpop.f32.mrb[91].mxu1 }
 0x352   : > { %v4602_v48 = vpop.f32.mrb[109].mxu0 }
 0x353   : > { %v2667_v60 = vadd.f32 %v2645_v54, %v2523_v12 }
 0x354   : > { %v2506_v62 = vpop.f32.mrb[92].mxu1 }
 0x355   : > { %v2650_v28 = vpop.f32.mrb[110].mxu0  ;;  %v2524_v43 = vadd.f32 %v2506_v62, %v2370_v5  ;;  %v4568_v63 = vpop.f32.mrb[93].mxu1 }
 0x356   : > { %v4605_v19 = vpop.f32.mrb[111].mxu0 }
 0x357   : > { %v2668_v15 = vadd.f32 %v2650_v28, %v2524_v43 }
 0x358   : > { %v2511_v14 = vpop.f32.mrb[94].mxu1 }
 0x359   : > { %v2655_v6 = vpop.f32.mrb[112].mxu0  ;;  %v2525_v24 = vadd.f32 %v2511_v14, %v2375_v44  ;;  %v4571_v26 = vpop.f32.mrb[95].mxu1 }
 0x35a   : > { %v4608_v31 = vpop.f32.mrb[113].mxu0 }
 0x35b   : > { %v2669_v32 = vadd.f32 %v2655_v6, %v2525_v24 }
 0x35c   : > { %v2516_v35 = vpop.f32.mrb[96].mxu1 }
 0x35d   : > { %v2660_v36 = vpop.f32.mrb[114].mxu0  ;;  %v2526_v1 = vadd.f32 %v2516_v35, %v2380_v11  ;;  %v4574_v55 = vpop.f32.mrb[97].mxu1 }
 0x35e   : > { %v4611_v2 = vpop.f32.mrb[115].mxu0 }
 0x35f   : > { %v2670_v4 = vadd.f32 %v2660_v36, %v2526_v1 }
 0x360   : > { %v2774_v7 = vpop.f32.mrb[98].mxu1 }
 0x361   : > { %v2918_v29 = vpop.f32.mrb[116].mxu0  ;;  %v2808_v38 = vadd.f32 %v2774_v7, %v2664_v25  ;;  %v4630_v8 = vpop.f32.mrb[99].mxu1 }
 0x362   : > { %v4667_v46 = vpop.f32.mrb[117].mxu0 }
 0x363   : > { %v2952_v57 = vadd.f32 %v2918_v29, %v2808_v38 }
 0x364   : > { %v2779_v39 = vpop.f32.mrb[100].mxu1 }
 0x365   : > { %v2923_v9 = vpop.f32.mrb[118].mxu0  ;;  %v2809_v53 = vadd.f32 %v2779_v39, %v2665_v0  ;;  %v4633_v5 = vpop.f32.mrb[101].mxu1 }
 0x366   : > { %v4670_v16 = vpop.f32.mrb[119].mxu0 }
 0x367   : > { %v2953_v17 = vadd.f32 %v2923_v9, %v2809_v53 }
 0x368   : > { %v2784_v21 = vpop.f32.mrb[102].mxu1 }
 0x369   : > { %v2928_v37 = vpop.f32.mrb[120].mxu0  ;;  %v2810_v44 = vadd.f32 %v2784_v21, %v2666_v42  ;;  %v4636_v58 = vpop.f32.mrb[103].mxu1 }
 0x36a   : > { %v4673_v61 = vpop.f32.mrb[121].mxu0 }
 0x36b   : > { %v2954_v10 = vadd.f32 %v2928_v37, %v2810_v44 }
 0x36c   : > { %v2789_v49 = vpop.f32.mrb[104].mxu1 }
 0x36d   : > { %v2933_v11 = vpop.f32.mrb[122].mxu0  ;;  %v2811_v3 = vadd.f32 %v2789_v49, %v2667_v60  ;;  %v4639_v13 = vpop.f32.mrb[105].mxu1 }
 0x36e   : > { %v4676_v18 = vpop.f32.mrb[123].mxu0  ;;  %v3765_v13 = vld [vmem:[%s6432_s7] ss:$0 sm:$0xff] }
 0x36f   : > { %v2955_v20 = vadd.f32 %v2933_v11, %v2811_v3 }
 0x370   : > { %v2794_v56 = vpop.f32.mrb[106].mxu1 }
 0x371   : > { %v2938_v22 = vpop.f32.mrb[124].mxu0  ;;  %v2812_v23 = vadd.f32 %v2794_v56, %v2668_v15  ;;  %v4642_v25 = vpop.f32.mrb[107].mxu1 }
 0x372   : > { %v4679_v27 = vpop.f32.mrb[125].mxu0 }
 0x373   : > { %v2956_v30 = vadd.f32 %v2938_v22, %v2812_v23 }
 0x374   : > { %v2799_v33 = vpop.f32.mrb[108].mxu1 }
 0x375   : > { %v2943_v34 = vpop.f32.mrb[126].mxu0  ;;  %v2813_v40 = vadd.f32 %v2799_v33, %v2669_v32  ;;  %v4645_v0 = vpop.f32.mrb[109].mxu1 }
 0x376   : > { %v4682_v41 = vpop.f32.mrb[127].mxu0 }
 0x377   : > { %v2957_v45 = vadd.f32 %v2943_v34, %v2813_v40 }
 0x378   : > { %v2804_v47 = vpop.f32.mrb[110].mxu1 }
 0x379   : > { %v2948_v50 = vpop.f32.mrb[128].mxu0  ;;  %v2814_v51 = vadd.f32 %v2804_v47, %v2670_v4  ;;  %v4648_v42 = vpop.f32.mrb[111].mxu1 }
 0x37a   : > { %v4685_v52 = vpop.f32.mrb[129].mxu0 }
 0x37b   : > { %v2958_v54 = vadd.f32 %v2948_v50, %v2814_v51 }
 0x37c   : > { %v3062_v12 = vpop.f32.mrb[112].mxu1 }
 0x37d   : > { %v3206_v59 = vpop.f32.mrb[130].mxu0  ;;  %v3096_v48 = vadd.f32 %v3062_v12, %v2952_v57  ;;  %v4704_v60 = vpop.f32.mrb[113].mxu1 }
 0x37e   : > { %v4741_v62 = vpop.f32.mrb[131].mxu0 }
 0x37f   : > { %v3240_v28 = vadd.f32 %v3206_v59, %v3096_v48 }
 0x380   : > { %v3067_v43 = vpop.f32.mrb[114].mxu1 }
 0x381   : > { %v3211_v63 = vpop.f32.mrb[132].mxu0  ;;  %v3097_v19 = vadd.f32 %v3067_v43, %v2953_v17  ;;  %v4707_v15 = vpop.f32.mrb[115].mxu1 }
 0x382   : > { %v4744_v14 = vpop.f32.mrb[133].mxu0 }
 0x383   : > { %v3241_v6 = vadd.f32 %v3211_v63, %v3097_v19 }
 0x384   : > { %v3072_v24 = vpop.f32.mrb[116].mxu1 }
 0x385   : > { %v3216_v26 = vpop.f32.mrb[134].mxu0  ;;  %v3098_v31 = vadd.f32 %v3072_v24, %v2954_v10  ;;  %v4710_v32 = vpop.f32.mrb[117].mxu1 }
 0x386   : > { %v4747_v35 = vpop.f32.mrb[135].mxu0 }
 0x387   : > { %v3242_v36 = vadd.f32 %v3216_v26, %v3098_v31 }
 0x388   : > { %v3077_v1 = vpop.f32.mrb[118].mxu1 }
 0x389   : > { %v3221_v55 = vpop.f32.mrb[136].mxu0  ;;  %v3099_v2 = vadd.f32 %v3077_v1, %v2955_v20  ;;  %v4713_v4 = vpop.f32.mrb[119].mxu1 }
 0x38a   : > { %v4750_v7 = vpop.f32.mrb[137].mxu0 }
 0x38b   : > { %v3243_v29 = vadd.f32 %v3221_v55, %v3099_v2 }
 0x38c   : > { %v3082_v38 = vpop.f32.mrb[120].mxu1 }
 0x38d   : > { %v3226_v8 = vpop.f32.mrb[138].mxu0  ;;  %v3100_v46 = vadd.f32 %v3082_v38, %v2956_v30  ;;  %v4716_v57 = vpop.f32.mrb[121].mxu1 }
 0x38e   : > { %v4753_v39 = vpop.f32.mrb[139].mxu0 }
 0x38f   : > { %v3244_v9 = vadd.f32 %v3226_v8, %v3100_v46 }
 0x390   : > { %v3087_v53 = vpop.f32.mrb[122].mxu1 }
 0x391   : > { %v3231_v5 = vpop.f32.mrb[140].mxu0  ;;  %v3101_v16 = vadd.f32 %v3087_v53, %v2957_v45  ;;  %v4719_v17 = vpop.f32.mrb[123].mxu1 }
 0x392   : > { %v4756_v21 = vpop.f32.mrb[141].mxu0 }
 0x393   : > { %v3245_v37 = vadd.f32 %v3231_v5, %v3101_v16 }
 0x394   : > { %v3092_v44 = vpop.f32.mrb[124].mxu1 }
 0x395   : > { %v3236_v58 = vpop.f32.mrb[142].mxu0  ;;  %v3102_v61 = vadd.f32 %v3092_v44, %v2958_v54  ;;  %v4722_v10 = vpop.f32.mrb[125].mxu1 }
 0x396   : > { %v4759_v49 = vpop.f32.mrb[143].mxu0 }
 0x397   : > { %v3246_v11 = vadd.f32 %v3236_v58, %v3102_v61 }
 0x398   : > { %v3350_v3 = vpop.f32.mrb[126].mxu1 }
 0x399   : > { %v3384_v18 = vadd.f32 %v3350_v3, %v3240_v28  ;;  %v4778_v20 = vpop.f32.mrb[127].mxu1 }
 0x39b   : > { %v3398_v56 = vadd.f32 %v3765_v13, %v3384_v18 }
 0x39c   : > { %v3355_v22 = vpop.f32.mrb[128].mxu1 }
 0x39d   : > { %3406 = vst.msk [vmem:[%s6406_s10] sm:$0xff] %vm3405_vm7, %v3398_v56  ;;  %v3385_v23 = vadd.f32 %v3355_v22, %v3241_v6  ;;  %v4781_v25 = vpop.f32.mrb[129].mxu1 }
 0x39f   : > { %v3399_v27 = vadd.f32 %v3765_v13, %v3385_v23 }
 0x3a0   : > { %v3360_v30 = vpop.f32.mrb[130].mxu1 }
 0x3a1   : > { %3407 = vst.msk [vmem:[%s6406_s10 + $0x8] sm:$0xff] %vm3405_vm7, %v3399_v27  ;;  %v3386_v33 = vadd.f32 %v3360_v30, %v3242_v36  ;;  %v4784_v34 = vpop.f32.mrb[131].mxu1 }
 0x3a3   : > { %v3400_v40 = vadd.f32 %v3765_v13, %v3386_v33 }
 0x3a4   : > { %v3365_v0 = vpop.f32.mrb[132].mxu1 }
 0x3a5   : > { %3408 = vst.msk [vmem:[%s6406_s10 + $0x10] sm:$0xff] %vm3405_vm7, %v3400_v40  ;;  %v3387_v41 = vadd.f32 %v3365_v0, %v3243_v29  ;;  %v4787_v45 = vpop.f32.mrb[133].mxu1 }
 0x3a7   : > { %v3401_v47 = vadd.f32 %v3765_v13, %v3387_v41 }
 0x3a8   : > { %v3370_v50 = vpop.f32.mrb[134].mxu1 }
 0x3a9   : > { %3409 = vst.msk [vmem:[%s6406_s10 + $0x18] sm:$0xff] %vm3405_vm7, %v3401_v47  ;;  %v3388_v51 = vadd.f32 %v3370_v50, %v3244_v9  ;;  %v4790_v42 = vpop.f32.mrb[135].mxu1 }
 0x3ab   : > { %v3402_v52 = vadd.f32 %v3765_v13, %v3388_v51 }
 0x3ac   : > { %v3375_v54 = vpop.f32.mrb[136].mxu1 }
 0x3ad   : > { %3410 = vst.msk [vmem:[%s6406_s10 + $0x20] sm:$0xff] %vm3405_vm7, %v3402_v52  ;;  %v3389_v12 = vadd.f32 %v3375_v54, %v3245_v37  ;;  %v4793_v59 = vpop.f32.mrb[137].mxu1 }
 0x3af   : > { %v3403_v48 = vadd.f32 %v3765_v13, %v3389_v12 }
 0x3b0   : > { %v3380_v60 = vpop.f32.mrb[138].mxu1 }
 0x3b1   : > { %3411 = vst.msk [vmem:[%s6406_s10 + $0x28] sm:$0xff] %vm3405_vm7, %v3403_v48  ;;  %v3390_v62 = vadd.f32 %v3380_v60, %v3246_v11  ;;  %v4796_v28 = vpop.f32.mrb[139].mxu1 }
 0x3b3   : > { %v3404_v43 = vadd.f32 %v3765_v13, %v3390_v62 }
 0x3b5   : > { %3412 = vst.msk [vmem:[%s6406_s10 + $0x30] sm:$0xff] %vm3405_vm7, %v3404_v43 }
 0x3b6 PF: > { %s18_s27 = sadd.s32 1, %s5045_s27  }
 0x3b7   : > { %p15_p4 = scmp.ge.s32.totalorder %s18_s27, 4  }
 0x3b9   :  { %17 = sbr.rel (!%p15_p4) target bundleno = 1 (0x1), region = 98 }

</bundles_post_ra>
